<compile_context>
chip_gen: v7x
topology: tpu7x:2x2x1
jax: 0.10.0
libtpu: 0.0.40
codegen_flags: <defaults>
</compile_context>

<pallas_src>
import functools

import numpy as np
import jax
import jax.numpy as jnp
from jax.experimental import pallas as pl
from jax.experimental.pallas import tpu as pltpu


def _round_up(x, m):
    return (x + m - 1) // m * m


def _cdiv(a, b):
    return -(-a // b)


def _pick_tm(M, cap=512):
    """Largest MXU-friendly M tile (<= cap) that keeps >=2 grid blocks on the
       'parallel' M axis (v7x megacore) without excessive zero padding."""
    Mr = _round_up(M, 16)
    best = 16
    for c in (16, 32, 64, 128, 256, 512):
        if c > cap or c >= Mr:
            break
        if _round_up(Mr, c) - Mr <= max(Mr // 8, 16):   # <=12.5% pad waste
            best = c
    return best


# --------------- Pallas kernel 1: matmul + bias + act (single K step) ---------

def _mm_bias_act_kernel(x_ref, w_ref, b_ref, o_ref, *, act):
    # Full K resident per tile (K <= 576 here) -> no accumulator scratch, no
    # zero-init pass; bias + activation fused into the MXU epilogue.
    acc = jnp.dot(x_ref[...], w_ref[...], preferred_element_type=jnp.float32)
    acc = acc + b_ref[...]
    if act == "relu":
        acc = jnp.maximum(acc, 0.0)
    elif act == "lrelu":                       # LeakyReLU(0.2)
        acc = jnp.where(acc >= 0.0, acc, 0.2 * acc)
    o_ref[...] = acc.astype(o_ref.dtype)


def mm_bias_act(x, w, b, act, out_dtype=jnp.bfloat16):
    """(M,K) @ (K,N) + bias, fused activation.  bf16 MXU, f32 epilogue."""
    M, K = x.shape
    _, N = w.shape
    tm = _pick_tm(M)
    tn = min(256, _round_up(N, 128))           # lane-dense output tiles
    Kp = _round_up(K, 16)                      # bf16 sublane pack only (27->32)
    Mp, Np = _round_up(M, tm), _round_up(N, tn)

    xp = jnp.pad(x, ((0, Mp - M), (0, Kp - K))).astype(jnp.bfloat16)
    wp = jnp.pad(w, ((0, Kp - K), (0, Np - N))).astype(jnp.bfloat16)
    bp = jnp.pad(b.astype(jnp.float32), (0, Np - N)).reshape(1, Np)

    out = pl.pallas_call(
        functools.partial(_mm_bias_act_kernel, act=act),
        out_shape=jax.ShapeDtypeStruct((Mp, Np), out_dtype),
        grid_spec=pltpu.PrefetchScalarGridSpec(
            num_scalar_prefetch=0,
            grid=(Mp // tm, Np // tn),
            in_specs=[pl.BlockSpec((tm, Kp), lambda i, j: (i, 0)),
                      pl.BlockSpec((Kp, tn), lambda i, j: (0, j)),
                      pl.BlockSpec((1, tn), lambda i, j: (0, j))],
            out_specs=pl.BlockSpec((tm, tn), lambda i, j: (i, j))),
        compiler_params=pltpu.CompilerParams(
            dimension_semantics=("parallel", "parallel")),
    )(xp, wp, bp)
    return out[:M, :N]


# --------- Pallas kernel 2: fused c3 (3x3, 64->128, ReLU) + match0 (1x1) ------

def _c3_match_kernel(x_ref, w3_ref, b3_ref, wm_ref, bm_ref, o_ref):
    h = jnp.dot(x_ref[...], w3_ref[...], preferred_element_type=jnp.float32)
    h = jnp.maximum(h + b3_ref[...], 0.0)                       # c3 ReLU, (tm,128) f32
    m = jnp.dot(h.astype(jnp.bfloat16), wm_ref[...],
                preferred_element_type=jnp.float32)             # match0 1x1, (tm,128)
    m = m + bm_ref[...]
    m = jnp.where(m >= 0.0, m, 0.2 * m)                         # LeakyReLU(0.2)
    o_ref[...] = m.astype(o_ref.dtype)


def c3_match_mm(x, w3, b3, wm, bm, out_dtype=jnp.bfloat16):
    """x:(M,K) im2col of c3 input; w3:(K,128); wm:(128,16).  Returns (M,16).
       The 128-channel c3 activation stays in VMEM (never written to HBM)."""
    M, K = x.shape
    N3 = w3.shape[1]                            # 128
    Nm = wm.shape[1]                            # 16
    Nmp = _round_up(Nm, 128)                    # lane-dense output (sliced after)
    Kp = _round_up(K, 16)
    tm = _pick_tm(M)
    Mp = _round_up(M, tm)

    xp = jnp.pad(x, ((0, Mp - M), (0, Kp - K))).astype(jnp.bfloat16)
    w3p = jnp.pad(w3, ((0, Kp - K), (0, 0))).astype(jnp.bfloat16)
    b3p = b3.astype(jnp.float32).reshape(1, N3)
    wmp = jnp.pad(wm, ((0, 0), (0, Nmp - Nm))).astype(jnp.bfloat16)
    bmp = jnp.pad(bm.astype(jnp.float32), (0, Nmp - Nm)).reshape(1, Nmp)

    out = pl.pallas_call(
        _c3_match_kernel,
        out_shape=jax.ShapeDtypeStruct((Mp, Nmp), out_dtype),
        grid_spec=pltpu.PrefetchScalarGridSpec(
            num_scalar_prefetch=0,
            grid=(Mp // tm,),
            in_specs=[pl.BlockSpec((tm, Kp), lambda i: (i, 0)),
                      pl.BlockSpec((Kp, N3), lambda i: (0, 0)),
                      pl.BlockSpec((1, N3), lambda i: (0, 0)),
                      pl.BlockSpec((N3, Nmp), lambda i: (0, 0)),
                      pl.BlockSpec((1, Nmp), lambda i: (0, 0))],
            out_specs=pl.BlockSpec((tm, Nmp), lambda i: (i, 0))),
        compiler_params=pltpu.CompilerParams(
            dimension_semantics=("parallel",)),
    )(xp, w3p, b3p, wmp, bmp)
    return out[:M, :Nm]


# ------------- Pallas kernel 3: streamed correlation + online argmax ----------

def _corr_kernel(*refs, tk, has_bias):
    if has_bias:
        w_ref, q_ref, bias_ref, rmap_ref, idx_ref, m_run, i_run = refs
    else:
        w_ref, q_ref, rmap_ref, idx_ref, m_run, i_run = refs
        bias_ref = None

    ki = pl.program_id(2)

    @pl.when(ki == 0)
    def _():
        m_run[...] = jnp.full(m_run.shape, -jnp.inf, jnp.float32)
        i_run[...] = jnp.zeros(i_run.shape, jnp.int32)

    w = w_ref[0]                                # (tk, P) bf16 unit-norm key patches
    q = q_ref[0]                                # (P, tq) bf16 query patches (pre-T)

    # Canonical (tk,P)@(P,tq) MXU dot, f32 accumulate.
    s = jnp.dot(w, q, preferred_element_type=jnp.float32)          # (tk, tq)
    if has_bias:                                # only passed when Lk % tk != 0
        s = s + bias_ref[...]                   # (tk,1) additive 0 / -inf

    # Tile-local max + first-index-of-max; cross-tile via running scratch.
    row = jax.lax.broadcasted_iota(jnp.int32, s.shape, 0) + ki * tk
    t_max = jnp.max(s, axis=0, keepdims=True)                       # (1, tq)
    t_idx = jnp.min(jnp.where(s == t_max, row, jnp.int32(2 ** 30)),
                    axis=0, keepdims=True)                          # (1, tq)

    upd = t_max > m_run[...]        # strict > keeps earlier (first) index on ties
    i_run[...] = jnp.where(upd, t_idx, i_run[...])
    m_run[...] = jnp.where(upd, t_max, m_run[...])

    @pl.when(ki == pl.num_programs(2) - 1)
    def _():
        rmap_ref[...] = m_run[...].reshape(1, 1, -1)
        idx_ref[...] = i_run[...].reshape(1, 1, -1)


def correlation_argmax(w_patches, q_patches):
    """w_patches: (B, Lk, P) key patches; q_patches: (B, Lq, P) query patches.
       Returns relevance (B, Lq) f32 (max cosine) and hard indices (B, Lq) i32."""
    B, Lk, P = w_patches.shape
    _, Lq, _ = q_patches.shape

    # Key L2-normalization once, in f32, in the wrapper (was per-step in-kernel).
    w32 = w_patches.astype(jnp.float32)
    w_nrm = jnp.sqrt(jnp.sum(w32 * w32, axis=-1, keepdims=True))
    w_unit = w32 / jnp.maximum(w_nrm, 1e-12)

    # Tile sizes: big lane-dense tq, modest tk; keep >=2 parallel blocks for v7x.
    tq = min(512, _round_up(Lq, 128))
    while tq > 128 and _round_up(Lq, tq) - Lq >= tq // 2:
        tq -= 128
    if B == 1:
        while tq > 128 and _cdiv(_round_up(Lq, tq), tq) < 2:
            tq -= 128
    tk = min(256, _round_up(Lk, 16))
    while tk > 16 and _round_up(Lk, tk) - Lk >= tk // 2:
        tk //= 2
    Lqp, Lkp = _round_up(Lq, tq), _round_up(Lk, tk)

    wp = jnp.pad(w_unit, ((0, 0), (0, Lkp - Lk), (0, 0))).astype(jnp.bfloat16)
    qT = jnp.transpose(q_patches, (0, 2, 1))                        # (B, P, Lq)
    qp = jnp.pad(qT, ((0, 0), (0, 0), (0, Lqp - Lq))).astype(jnp.bfloat16)

    has_bias = Lkp != Lk
    inputs = [wp, qp]
    in_specs = [pl.BlockSpec((1, tk, P), lambda b, qi, ki: (b, ki, 0)),
                pl.BlockSpec((1, P, tq), lambda b, qi, ki: (b, 0, qi))]
    if has_bias:
        neg = jnp.where(jnp.arange(Lkp) < Lk, 0.0, -jnp.inf).astype(jnp.float32)
        inputs.append(neg.reshape(Lkp, 1))
        in_specs.append(pl.BlockSpec((tk, 1), lambda b, qi, ki: (ki, 0)))

    rmap, idx = pl.pallas_call(
        functools.partial(_corr_kernel, tk=tk, has_bias=has_bias),
        out_shape=(jax.ShapeDtypeStruct((B, 1, Lqp), jnp.float32),
                   jax.ShapeDtypeStruct((B, 1, Lqp), jnp.int32)),
        grid_spec=pltpu.PrefetchScalarGridSpec(
            num_scalar_prefetch=0,
            grid=(B, Lqp // tq, Lkp // tk),
            in_specs=in_specs,
            out_specs=(pl.BlockSpec((1, 1, tq), lambda b, qi, ki: (b, 0, qi)),
                       pl.BlockSpec((1, 1, tq), lambda b, qi, ki: (b, 0, qi))),
            scratch_shapes=[pltpu.VMEM((1, tq), jnp.float32),
                            pltpu.VMEM((1, tq), jnp.int32)]),
        compiler_params=pltpu.CompilerParams(
            dimension_semantics=("parallel", "parallel", "arbitrary")),
    )(*inputs)

    # Query L2-norm is a positive per-column scale (does not change the argmax):
    # apply once on the tiny (B, Lq) result, in f32.
    q32 = q_patches.astype(jnp.float32)
    qn = jnp.sqrt(jnp.sum(q32 * q32, axis=-1))                      # (B, Lq)
    rmap = rmap[:, 0, :Lq] / jnp.maximum(qn, 1e-12)
    return rmap, idx[:, 0, :Lq]


# ------------------------------- JAX glue (NHWC) ------------------------------

def extract_patches_nhwc(x, k, mode, pad=0):
    """Sliding k x k patches, stride 1.  Returns (B, Ho*Wo, k*k*C); the
       (ki, kj, C) flattening order is consistent between query and key."""
    B, H, W, C = x.shape
    if mode == "reflect_same":                   # same_padding() + ReflectionPad2d
        pt = (k - 1) // 2
        pb = (k - 1) - pt
        x = jnp.pad(x, ((0, 0), (pt, pb), (pt, pb), (0, 0)), mode="reflect")
    elif mode == "zero":                         # Conv2d zero padding
        x = jnp.pad(x, ((0, 0), (pad, pad), (pad, pad), (0, 0)))
    Ho = x.shape[1] - k + 1
    Wo = x.shape[2] - k + 1
    cols = [x[:, i:i + Ho, j:j + Wo, :] for i in range(k) for j in range(k)]
    patches = jnp.stack(cols, axis=3)            # (B, Ho, Wo, k*k, C)
    return patches.reshape(B, Ho * Wo, k * k * C)


def conv2d_nhwc(x, weight, bias, act=None):
    """nn.Conv2d(padding=k//2, stride=1) via im2col + fused Pallas matmul.
       weight is PyTorch-layout (Cout, Cin, k, k); activations are NHWC."""
    Cout, Cin, k, _ = weight.shape
    B, H, W, C = x.shape
    patches = extract_patches_nhwc(x, k, "zero", pad=k // 2)
    xm = patches.reshape(B * H * W, k * k * C)
    wm = jnp.transpose(weight, (2, 3, 1, 0)).reshape(k * k * Cin, Cout)
    out = mm_bias_act(xm, wm, bias, act)         # (B*H*W, Cout) bf16
    return out.reshape(B, H, W, Cout)


def conv3_match_nhwc(x, w3, b3, wm, bm):
    """c3 (3x3, 64->128, ReLU) fused with match0 (1x1, 128->16, LeakyReLU 0.2)."""
    B, H, W, C = x.shape
    patches = extract_patches_nhwc(x, 3, "zero", pad=1)
    xm = patches.reshape(B * H * W, 9 * C)
    w3m = jnp.transpose(w3, (2, 3, 1, 0)).reshape(9 * C, w3.shape[0])   # (9C, 128)
    wmm = wm.reshape(wm.shape[0], wm.shape[1]).T                        # (128, 16)
    out = c3_match_mm(xm, w3m, b3, wmm, bm)                             # (BHW, 16)
    return out.reshape(B, H, W, wm.shape[0])


def maxpool2_nhwc(x):
    B, H, W, C = x.shape
    return x.reshape(B, H // 2, 2, W // 2, 2, C).max(axis=(2, 4))


def avgpool_nhwc(x, s):
    B, H, W, C = x.shape
    return x.reshape(B, H // s, s, W // s, s, C).mean(axis=(2, 4))


def _cubic_w(d, A=-0.75):                        # PyTorch bicubic kernel (A=-0.75)
    d = np.abs(d)
    return np.where(
        d <= 1.0, (A + 2) * d ** 3 - (A + 3) * d ** 2 + 1.0,
        np.where(d < 2.0, A * d ** 3 - 5 * A * d ** 2 + 8 * A * d - 4 * A, 0.0))


def _bicubic_matrix(n_in, n_out):
    # F.interpolate(..., mode='bicubic', align_corners=True) row weights
    src = np.arange(n_out) * (n_in - 1) / max(n_out - 1, 1)
    i0 = np.floor(src).astype(np.int64)
    t = src - i0
    M = np.zeros((n_out, n_in), dtype=np.float64)
    for kk in range(-1, 3):
        w = _cubic_w(kk - t)
        idx = np.clip(i0 + kk, 0, n_in - 1)      # border clamping as in PyTorch
        for o in range(n_out):
            M[o, idx[o]] += w[o]
    return jnp.asarray(M, dtype=jnp.float32)


def bicubic_up2_nhwc(x):
    B, H, W, C = x.shape
    Mh = _bicubic_matrix(H, 2 * H)
    Mw = _bicubic_matrix(W, 2 * W)
    return jnp.einsum("oh,bhwc,pw->bopc", Mh, x.astype(jnp.float32), Mw)


# feature_extract = VGG19.features[0:7] + match0 (Conv 128->16 1x1 + LeakyReLU 0.2)
def init_params(key):
    ks = jax.random.split(key, 8)
    def w(k, shape, scale=0.05):
        return scale * jax.random.normal(k, shape, jnp.float32)
    return {
        "c1_w": w(ks[0], (64, 3, 3, 3)),   "c1_b": w(ks[1], (64,), 0.01),
        "c2_w": w(ks[2], (64, 64, 3, 3)),  "c2_b": w(ks[3], (64,), 0.01),
        "c3_w": w(ks[4], (128, 64, 3, 3)), "c3_b": w(ks[5], (128,), 0.01),
        "m_w":  w(ks[6], (16, 128, 1, 1)), "m_b":  w(ks[7], (16,), 0.01),
    }


def feature_extract(params, x):
    x = conv2d_nhwc(x, params["c1_w"], params["c1_b"], act="relu")   # vgg 0,1
    x = conv2d_nhwc(x, params["c2_w"], params["c2_b"], act="relu")   # vgg 2,3
    x = maxpool2_nhwc(x)                                             # vgg 4
    x = conv3_match_nhwc(x, params["c3_w"], params["c3_b"],          # vgg 5,6
                         params["m_w"], params["m_b"])               # + match0 fused
    return x


def feature_matching_forward(params, query, key_img, flag_8k, ksize=3, scale=2):
    # Host-facing tensors are PyTorch NCHW; convert to NHWC once.
    # (self.sub_mean is defined in __init__ but never used in forward.)
    q = jnp.transpose(query, (0, 2, 3, 1))
    k = jnp.transpose(key_img, (0, 2, 3, 1))

    if not flag_8k:
        q = bicubic_up2_nhwc(q)
    qf = feature_extract(params, q)
    B, Hq, Wq, Cq = qf.shape
    q_patches = extract_patches_nhwc(qf, ksize, "reflect_same")      # (B, Lq, 9C)

    kf = avgpool_nhwc(k, scale)
    if not flag_8k:
        kf = bicubic_up2_nhwc(kf)
    kf = feature_extract(params, kf)
    w_patches = extract_patches_nhwc(kf, ksize, "reflect_same")      # (B, Lk, 9C)

    rmap, hard_idx = correlation_argmax(w_patches, q_patches)
    relavance_maps = rmap.reshape(B, 1, Hq, Wq)
    # TODO(synk): PyTorch returns int64 indices; int32 is sufficient for Lk < 2^31.
    hard_indices = hard_idx                                          # (B, Lq) i32
    return relavance_maps, hard_indices


if __name__ == "__main__":
    root = jax.random.PRNGKey(0)
    kq, kk, kp = jax.random.split(root, 3)
    B = 2
    query = jax.random.uniform(kq, (B, 3, 8, 8), dtype=jnp.float32)
    key_img = jax.random.uniform(kk, (B, 3, 16, 16), dtype=jnp.float32)
    params = init_params(kp)

    fwd = jax.jit(functools.partial(feature_matching_forward, flag_8k=False))
    rmap, hidx = fwd(params, query, key_img)
    jax.block_until_ready((rmap, hidx))

    assert rmap.shape == (B, 1, 8, 8), rmap.shape
    assert hidx.shape == (B, 64), hidx.shape
    assert hidx.dtype == jnp.int32
    assert bool(jnp.all(jnp.isfinite(rmap)))
    assert bool(jnp.all((hidx >= 0) & (hidx < 64)))
    print("KERNEL_OK")
</pallas_src>

<mosaic_0001>
module attributes {stable_mosaic.version = 11 : i64} {
  func.func @_mm_bias_act_kernel(%arg0: i32, %arg1: i32, %arg2: memref<256x32xbf16, #tpu.memory_space<vmem>>, %arg3: memref<32x128xbf16, #tpu.memory_space<vmem>>, %arg4: memref<1x128xf32, #tpu.memory_space<vmem>>, %arg5: memref<256x128xbf16, #tpu.memory_space<vmem>>) attributes {dimension_semantics = [#tpu.dimension_semantics<parallel>, #tpu.dimension_semantics<parallel>], iteration_bounds = array<i64: 2, 1>, scalar_prefetch = 0 : i64, scratch_operands = 0 : i64, tpu.core_type = #tpu.core_type<tc>, window_params = [{transform_indices = @transform_0, window_bounds = array<i64: 256, 32>}, {transform_indices = @transform_1, window_bounds = array<i64: 32, 128>}, {transform_indices = @transform_2, window_bounds = array<i64: 1, 128>}, {transform_indices = @transform_3, window_bounds = array<i64: 256, 128>}]} {
    %c0 = arith.constant 0 : index
    %c0_0 = arith.constant 0 : index
    %0 = vector.load %arg2[%c0, %c0_0] : memref<256x32xbf16, #tpu.memory_space<vmem>>, vector<256x32xbf16>
    %c0_1 = arith.constant 0 : index
    %c0_2 = arith.constant 0 : index
    %1 = vector.load %arg3[%c0_1, %c0_2] : memref<32x128xbf16, #tpu.memory_space<vmem>>, vector<32x128xbf16>
    %cst = arith.constant dense<0.000000e+00> : vector<256x128xf32>
    %2 = tpu.matmul %0, %1, %cst {dimension_numbers = #tpu.dot_dimension_numbers<[1], [0], [0], [1], [0, 0, 1, 1], [], []>} : vector<256x32xbf16>, vector<32x128xbf16>, vector<256x128xf32> -> vector<256x128xf32>
    %c0_3 = arith.constant 0 : index
    %c0_4 = arith.constant 0 : index
    %3 = vector.load %arg4[%c0_3, %c0_4] : memref<1x128xf32, #tpu.memory_space<vmem>>, vector<1x128xf32>
    %4 = vector.broadcast %3 : vector<1x128xf32> to vector<256x128xf32>
    %5 = arith.addf %2, %4 : vector<256x128xf32>
    %cst_5 = arith.constant 0.000000e+00 : f32
    %6 = vector.broadcast %cst_5 : f32 to vector<256x128xf32>
    %7 = arith.maximumf %5, %6 : vector<256x128xf32>
    %8 = arith.truncf %7 : vector<256x128xf32> to vector<256x128xbf16>
    %c0_6 = arith.constant 0 : index
    %c0_7 = arith.constant 0 : index
    %9 = vector.load %arg5[%c0_6, %c0_7] : memref<256x128xbf16, #tpu.memory_space<vmem>>, vector<256x128xbf16>
    tpu.vector_store %arg5[%c0_6, %c0_7], %8 {strides = array<i32>} : memref<256x128xbf16, #tpu.memory_space<vmem>>, vector<256x128xbf16>,
    return
  }
  func.func @transform_0(%arg0: i32, %arg1: i32) -> (i32, i32) {
    %c0_i32 = arith.constant 0 : i32
    %c0_i32_0 = arith.constant 0 : i32
    return %arg0, %c0_i32 : i32, i32
  }
  func.func @transform_1(%arg0: i32, %arg1: i32) -> (i32, i32) {
    %c0_i32 = arith.constant 0 : i32
    %c0_i32_0 = arith.constant 0 : i32
    return %c0_i32, %arg1 : i32, i32
  }
  func.func @transform_2(%arg0: i32, %arg1: i32) -> (i32, i32) {
    %c0_i32 = arith.constant 0 : i32
    %c0_i32_0 = arith.constant 0 : i32
    return %c0_i32, %arg1 : i32, i32
  }
  func.func @transform_3(%arg0: i32, %arg1: i32) -> (i32, i32) {
    %c0_i32 = arith.constant 0 : i32
    return %arg0, %arg1 : i32, i32
  }
}

module attributes {stable_mosaic.version = 11 : i64} {
  func.func @_mm_bias_act_kernel(%arg0: i32, %arg1: i32, %arg2: memref<256x576xbf16, #tpu.memory_space<vmem>>, %arg3: memref<576x128xbf16, #tpu.memory_space<vmem>>, %arg4: memref<1x128xf32, #tpu.memory_space<vmem>>, %arg5: memref<256x128xbf16, #tpu.memory_space<vmem>>) attributes {dimension_semantics = [#tpu.dimension_semantics<parallel>, #tpu.dimension_semantics<parallel>], iteration_bounds = array<i64: 2, 1>, scalar_prefetch = 0 : i64, scratch_operands = 0 : i64, tpu.core_type = #tpu.core_type<tc>, window_params = [{transform_indices = @transform_0, window_bounds = array<i64: 256, 576>}, {transform_indices = @transform_1, window_bounds = array<i64: 576, 128>}, {transform_indices = @transform_2, window_bounds = array<i64: 1, 128>}, {transform_indices = @transform_3, window_bounds = array<i64: 256, 128>}]} {
    %c0 = arith.constant 0 : index
    %c0_0 = arith.constant 0 : index
    %0 = vector.load %arg2[%c0, %c0_0] : memref<256x576xbf16, #tpu.memory_space<vmem>>, vector<256x576xbf16>
    %c0_1 = arith.constant 0 : index
    %c0_2 = arith.constant 0 : index
    %1 = vector.load %arg3[%c0_1, %c0_2] : memref<576x128xbf16, #tpu.memory_space<vmem>>, vector<576x128xbf16>
    %cst = arith.constant dense<0.000000e+00> : vector<256x128xf32>
    %2 = tpu.matmul %0, %1, %cst {dimension_numbers = #tpu.dot_dimension_numbers<[1], [0], [0], [1], [0, 0, 1, 1], [], []>} : vector<256x576xbf16>, vector<576x128xbf16>, vector<256x128xf32> -> vector<256x128xf32>
    %c0_3 = arith.constant 0 : index
    %c0_4 = arith.constant 0 : index
    %3 = vector.load %arg4[%c0_3, %c0_4] : memref<1x128xf32, #tpu.memory_space<vmem>>, vector<1x128xf32>
    %4 = vector.broadcast %3 : vector<1x128xf32> to vector<256x128xf32>
    %5 = arith.addf %2, %4 : vector<256x128xf32>
    %cst_5 = arith.constant 0.000000e+00 : f32
    %6 = vector.broadcast %cst_5 : f32 to vector<256x128xf32>
    %7 = arith.maximumf %5, %6 : vector<256x128xf32>
    %8 = arith.truncf %7 : vector<256x128xf32> to vector<256x128xbf16>
    %c0_6 = arith.constant 0 : index
    %c0_7 = arith.constant 0 : index
    %9 = vector.load %arg5[%c0_6, %c0_7] : memref<256x128xbf16, #tpu.memory_space<vmem>>, vector<256x128xbf16>
    tpu.vector_store %arg5[%c0_6, %c0_7], %8 {strides = array<i32>} : memref<256x128xbf16, #tpu.memory_space<vmem>>, vector<256x128xbf16>,
    return
  }
  func.func @transform_0(%arg0: i32, %arg1: i32) -> (i32, i32) {
    %c0_i32 = arith.constant 0 : i32
    %c0_i32_0 = arith.constant 0 : i32
    return %arg0, %c0_i32 : i32, i32
  }
  func.func @transform_1(%arg0: i32, %arg1: i32) -> (i32, i32) {
    %c0_i32 = arith.constant 0 : i32
    %c0_i32_0 = arith.constant 0 : i32
    return %c0_i32, %arg1 : i32, i32
  }
  func.func @transform_2(%arg0: i32, %arg1: i32) -> (i32, i32) {
    %c0_i32 = arith.constant 0 : i32
    %c0_i32_0 = arith.constant 0 : i32
    return %c0_i32, %arg1 : i32, i32
  }
  func.func @transform_3(%arg0: i32, %arg1: i32) -> (i32, i32) {
    %c0_i32 = arith.constant 0 : i32
    return %arg0, %arg1 : i32, i32
  }
}

module attributes {stable_mosaic.version = 11 : i64} {
  func.func @_c3_match_kernel(%arg0: i32, %arg1: memref<64x576xbf16, #tpu.memory_space<vmem>>, %arg2: memref<576x128xbf16, #tpu.memory_space<vmem>>, %arg3: memref<1x128xf32, #tpu.memory_space<vmem>>, %arg4: memref<128x128xbf16, #tpu.memory_space<vmem>>, %arg5: memref<1x128xf32, #tpu.memory_space<vmem>>, %arg6: memref<64x128xbf16, #tpu.memory_space<vmem>>) attributes {dimension_semantics = [#tpu.dimension_semantics<parallel>], iteration_bounds = array<i64: 2>, scalar_prefetch = 0 : i64, scratch_operands = 0 : i64, tpu.core_type = #tpu.core_type<tc>, window_params = [{transform_indices = @transform_0, window_bounds = array<i64: 64, 576>}, {pipeline_mode = #tpu.pipeline_mode<synchronous>, transform_indices = @transform_1, window_bounds = array<i64: 576, 128>}, {pipeline_mode = #tpu.pipeline_mode<synchronous>, transform_indices = @transform_2, window_bounds = array<i64: 1, 128>}, {pipeline_mode = #tpu.pipeline_mode<synchronous>, transform_indices = @transform_3, window_bounds = array<i64: 128, 128>}, {pipeline_mode = #tpu.pipeline_mode<synchronous>, transform_indices = @transform_4, window_bounds = array<i64: 1, 128>}, {transform_indices = @transform_5, window_bounds = array<i64: 64, 128>}]} {
    %c0 = arith.constant 0 : index
    %c0_0 = arith.constant 0 : index
    %0 = vector.load %arg1[%c0, %c0_0] : memref<64x576xbf16, #tpu.memory_space<vmem>>, vector<64x576xbf16>
    %c0_1 = arith.constant 0 : index
    %c0_2 = arith.constant 0 : index
    %1 = vector.load %arg2[%c0_1, %c0_2] : memref<576x128xbf16, #tpu.memory_space<vmem>>, vector<576x128xbf16>
    %cst = arith.constant dense<0.000000e+00> : vector<64x128xf32>
    %2 = tpu.matmul %0, %1, %cst {dimension_numbers = #tpu.dot_dimension_numbers<[1], [0], [0], [1], [0, 0, 1, 1], [], []>} : vector<64x576xbf16>, vector<576x128xbf16>, vector<64x128xf32> -> vector<64x128xf32>
    %c0_3 = arith.constant 0 : index
    %c0_4 = arith.constant 0 : index
    %3 = vector.load %arg3[%c0_3, %c0_4] : memref<1x128xf32, #tpu.memory_space<vmem>>, vector<1x128xf32>
    %4 = vector.broadcast %3 : vector<1x128xf32> to vector<64x128xf32>
    %5 = arith.addf %2, %4 : vector<64x128xf32>
    %cst_5 = arith.constant 0.000000e+00 : f32
    %6 = vector.broadcast %cst_5 : f32 to vector<64x128xf32>
    %7 = arith.maximumf %5, %6 : vector<64x128xf32>
    %8 = arith.truncf %7 : vector<64x128xf32> to vector<64x128xbf16>
    %c0_6 = arith.constant 0 : index
    %c0_7 = arith.constant 0 : index
    %9 = vector.load %arg4[%c0_6, %c0_7] : memref<128x128xbf16, #tpu.memory_space<vmem>>, vector<128x128xbf16>
    %cst_8 = arith.constant dense<0.000000e+00> : vector<64x128xf32>
    %10 = tpu.matmul %8, %9, %cst_8 {dimension_numbers = #tpu.dot_dimension_numbers<[1], [0], [0], [1], [0, 0, 1, 1], [], []>} : vector<64x128xbf16>, vector<128x128xbf16>, vector<64x128xf32> -> vector<64x128xf32>
    %c0_9 = arith.constant 0 : index
    %c0_10 = arith.constant 0 : index
    %11 = vector.load %arg5[%c0_9, %c0_10] : memref<1x128xf32, #tpu.memory_space<vmem>>, vector<1x128xf32>
    %12 = vector.broadcast %11 : vector<1x128xf32> to vector<64x128xf32>
    %13 = arith.addf %10, %12 : vector<64x128xf32>
    %cst_11 = arith.constant 0.000000e+00 : f32
    %14 = vector.broadcast %cst_11 : f32 to vector<64x128xf32>
    %15 = arith.cmpf oge, %13, %14 : vector<64x128xf32>
    %cst_12 = arith.constant 2.000000e-01 : f32
    %16 = vector.broadcast %cst_12 : f32 to vector<64x128xf32>
    %17 = arith.mulf %16, %13 : vector<64x128xf32>
    %18 = arith.select %15, %13, %17 : vector<64x128xi1>, vector<64x128xf32>
    %19 = arith.truncf %18 : vector<64x128xf32> to vector<64x128xbf16>
    %c0_13 = arith.constant 0 : index
    %c0_14 = arith.constant 0 : index
    %20 = vector.load %arg6[%c0_13, %c0_14] : memref<64x128xbf16, #tpu.memory_space<vmem>>, vector<64x128xbf16>
    tpu.vector_store %arg6[%c0_13, %c0_14], %19 {strides = array<i32>} : memref<64x128xbf16, #tpu.memory_space<vmem>>, vector<64x128xbf16>,
    return
  }
  func.func @transform_0(%arg0: i32) -> (i32, i32) {
    %c0_i32 = arith.constant 0 : i32
    %c0_i32_0 = arith.constant 0 : i32
    return %arg0, %c0_i32 : i32, i32
  }
  func.func @transform_1(%arg0: i32) -> (i32, i32) {
    %c0_i32 = arith.constant 0 : i32
    %c0_i32_0 = arith.constant 0 : i32
    %c0_i32_1 = arith.constant 0 : i32
    return %c0_i32, %c0_i32_0 : i32, i32
  }
  func.func @transform_2(%arg0: i32) -> (i32, i32) {
    %c0_i32 = arith.constant 0 : i32
    %c0_i32_0 = arith.constant 0 : i32
    %c0_i32_1 = arith.constant 0 : i32
    return %c0_i32, %c0_i32_0 : i32, i32
  }
  func.func @transform_3(%arg0: i32) -> (i32, i32) {
    %c0_i32 = arith.constant 0 : i32
    %c0_i32_0 = arith.constant 0 : i32
    %c0_i32_1 = arith.constant 0 : i32
    return %c0_i32, %c0_i32_0 : i32, i32
  }
  func.func @transform_4(%arg0: i32) -> (i32, i32) {
    %c0_i32 = arith.constant 0 : i32
    %c0_i32_0 = arith.constant 0 : i32
    %c0_i32_1 = arith.constant 0 : i32
    return %c0_i32, %c0_i32_0 : i32, i32
  }
  func.func @transform_5(%arg0: i32) -> (i32, i32) {
    %c0_i32 = arith.constant 0 : i32
    %c0_i32_0 = arith.constant 0 : i32
    return %arg0, %c0_i32 : i32, i32
  }
}

module attributes {stable_mosaic.version = 11 : i64} {
  func.func @_corr_kernel(%arg0: i32, %arg1: i32, %arg2: i32, %arg3: memref<1x64x144xbf16, #tpu.memory_space<vmem>>, %arg4: memref<1x144x128xbf16, #tpu.memory_space<vmem>>, %arg5: memref<1x1x128xf32, #tpu.memory_space<vmem>>, %arg6: memref<1x1x128xi32, #tpu.memory_space<vmem>>, %arg7: memref<1x128xf32, #tpu.memory_space<vmem>>, %arg8: memref<1x128xi32, #tpu.memory_space<vmem>>) attributes {dimension_semantics = [#tpu.dimension_semantics<parallel>, #tpu.dimension_semantics<parallel>, #tpu.dimension_semantics<arbitrary>], iteration_bounds = array<i64: 2, 1, 1>, scalar_prefetch = 0 : i64, scratch_operands = 2 : i64, tpu.core_type = #tpu.core_type<tc>, window_params = [{transform_indices = @transform_0, window_bounds = array<i64: 1, 64, 144>}, {transform_indices = @transform_1, window_bounds = array<i64: 1, 144, 128>}, {transform_indices = @transform_2, window_bounds = array<i64: 1, 1, 128>}, {transform_indices = @transform_3, window_bounds = array<i64: 1, 1, 128>}]} {
    %c0_i32 = arith.constant 0 : i32
    %0 = arith.cmpi eq, %arg2, %c0_i32 : i32
    %1 = arith.extui %0 : i1 to i32
    %c0_i32_0 = arith.constant 0 : i32
    %2 = arith.cmpi ne, %1, %c0_i32_0 : i32
    scf.if %2 {
      %cst_20 = arith.constant 0xFF800000 : f32
      %31 = vector.broadcast %cst_20 : f32 to vector<1x128xf32>
      %c0_21 = arith.constant 0 : index
      %c0_22 = arith.constant 0 : index
      %32 = vector.load %arg7[%c0_21, %c0_22] : memref<1x128xf32, #tpu.memory_space<vmem>>, vector<1x128xf32>
      tpu.vector_store %arg7[%c0_21, %c0_22], %31 {strides = array<i32>} : memref<1x128xf32, #tpu.memory_space<vmem>>, vector<1x128xf32>,
      %c0_i32_23 = arith.constant 0 : i32
      %33 = vector.broadcast %c0_i32_23 : i32 to vector<1x128xi32>
      %c0_24 = arith.constant 0 : index
      %c0_25 = arith.constant 0 : index
      %34 = vector.load %arg8[%c0_24, %c0_25] : memref<1x128xi32, #tpu.memory_space<vmem>>, vector<1x128xi32>
      tpu.vector_store %arg8[%c0_24, %c0_25], %33 {strides = array<i32>} : memref<1x128xi32, #tpu.memory_space<vmem>>, vector<1x128xi32>,
    } else {
    }
    %c0 = arith.constant 0 : index
    %c0_1 = arith.constant 0 : index
    %c0_2 = arith.constant 0 : index
    %3 = vector.load %arg3[%c0, %c0_1, %c0_2] : memref<1x64x144xbf16, #tpu.memory_space<vmem>>, vector<1x64x144xbf16>
    %4 = vector.shape_cast %3 : vector<1x64x144xbf16> to vector<64x144xbf16>
    %c0_3 = arith.constant 0 : index
    %c0_4 = arith.constant 0 : index
    %c0_5 = arith.constant 0 : index
    %5 = vector.load %arg4[%c0_3, %c0_4, %c0_5] : memref<1x144x128xbf16, #tpu.memory_space<vmem>>, vector<1x144x128xbf16>
    %6 = vector.shape_cast %5 : vector<1x144x128xbf16> to vector<144x128xbf16>
    %cst = arith.constant dense<0.000000e+00> : vector<64x128xf32>
    %7 = tpu.matmul %4, %6, %cst {dimension_numbers = #tpu.dot_dimension_numbers<[1], [0], [0], [1], [0, 0, 1, 1], [], []>} : vector<64x144xbf16>, vector<144x128xbf16>, vector<64x128xf32> -> vector<64x128xf32>
    %8 = tpu.iota {dimensions = array<i32: 0>} : vector<64x128xi32>
    %c64_i32 = arith.constant 64 : i32
    %9 = arith.muli %arg2, %c64_i32 : i32
    %10 = vector.broadcast %9 : i32 to vector<64x128xi32>
    %11 = arith.addi %8, %10 : vector<64x128xi32>
    %cst_6 = arith.constant dense<0xFF800000> : vector<128xf32>
    %12 = vector.multi_reduction <maximumf>, %7, %cst_6 [0] : vector<64x128xf32> to vector<128xf32>
    %13 = vector.shape_cast %12 : vector<128xf32> to vector<1x128xf32>
    %14 = vector.broadcast %13 : vector<1x128xf32> to vector<64x128xf32>
    %15 = arith.cmpf oeq, %7, %14 : vector<64x128xf32>
    %c1073741824_i32 = arith.constant 1073741824 : i32
    %16 = vector.broadcast %c1073741824_i32 : i32 to vector<64x128xi32>
    %17 = arith.select %15, %11, %16 : vector<64x128xi1>, vector<64x128xi32>
    %cst_7 = arith.constant dense<2147483647> : vector<128xi32>
    %18 = vector.multi_reduction <minsi>, %17, %cst_7 [0] : vector<64x128xi32> to vector<128xi32>
    %19 = vector.shape_cast %18 : vector<128xi32> to vector<1x128xi32>
    %c0_8 = arith.constant 0 : index
    %c0_9 = arith.constant 0 : index
    %20 = vector.load %arg7[%c0_8, %c0_9] : memref<1x128xf32, #tpu.memory_space<vmem>>, vector<1x128xf32>
    %21 = arith.cmpf ogt, %13, %20 : vector<1x128xf32>
    %c0_10 = arith.constant 0 : index
    %c0_11 = arith.constant 0 : index
    %22 = vector.load %arg8[%c0_10, %c0_11] : memref<1x128xi32, #tpu.memory_space<vmem>>, vector<1x128xi32>
    %23 = arith.select %21, %19, %22 : vector<1x128xi1>, vector<1x128xi32>
    %c0_12 = arith.constant 0 : index
    %c0_13 = arith.constant 0 : index
    %24 = vector.load %arg8[%c0_12, %c0_13] : memref<1x128xi32, #tpu.memory_space<vmem>>, vector<1x128xi32>
    tpu.vector_store %arg8[%c0_12, %c0_13], %23 {strides = array<i32>} : memref<1x128xi32, #tpu.memory_space<vmem>>, vector<1x128xi32>,
    %c0_14 = arith.constant 0 : index
    %c0_15 = arith.constant 0 : index
    %25 = vector.load %arg7[%c0_14, %c0_15] : memref<1x128xf32, #tpu.memory_space<vmem>>, vector<1x128xf32>
    %26 = arith.select %21, %13, %25 : vector<1x128xi1>, vector<1x128xf32>
    %c0_16 = arith.constant 0 : index
    %c0_17 = arith.constant 0 : index
    %27 = vector.load %arg7[%c0_16, %c0_17] : memref<1x128xf32, #tpu.memory_space<vmem>>, vector<1x128xf32>
    tpu.vector_store %arg7[%c0_16, %c0_17], %26 {strides = array<i32>} : memref<1x128xf32, #tpu.memory_space<vmem>>, vector<1x128xf32>,
    %c0_i32_18 = arith.constant 0 : i32
    %28 = arith.cmpi eq, %arg2, %c0_i32_18 : i32
    %29 = arith.extui %28 : i1 to i32
    %c0_i32_19 = arith.constant 0 : i32
    %30 = arith.cmpi ne, %29, %c0_i32_19 : i32
    scf.if %30 {
      %c0_20 = arith.constant 0 : index
      %c0_21 = arith.constant 0 : index
      %31 = vector.load %arg7[%c0_20, %c0_21] : memref<1x128xf32, #tpu.memory_space<vmem>>, vector<1x128xf32>
      %32 = vector.shape_cast %31 : vector<1x128xf32> to vector<1x1x128xf32>
      %c0_22 = arith.constant 0 : index
      %c0_23 = arith.constant 0 : index
      %c0_24 = arith.constant 0 : index
      %33 = vector.load %arg5[%c0_22, %c0_23, %c0_24] : memref<1x1x128xf32, #tpu.memory_space<vmem>>, vector<1x1x128xf32>
      tpu.vector_store %arg5[%c0_22, %c0_23, %c0_24], %32 {strides = array<i32>} : memref<1x1x128xf32, #tpu.memory_space<vmem>>, vector<1x1x128xf32>,
      %c0_25 = arith.constant 0 : index
      %c0_26 = arith.constant 0 : index
      %34 = vector.load %arg8[%c0_25, %c0_26] : memref<1x128xi32, #tpu.memory_space<vmem>>, vector<1x128xi32>
      %35 = vector.shape_cast %34 : vector<1x128xi32> to vector<1x1x128xi32>
      %c0_27 = arith.constant 0 : index
      %c0_28 = arith.constant 0 : index
      %c0_29 = arith.constant 0 : index
      %36 = vector.load %arg6[%c0_27, %c0_28, %c0_29] : memref<1x1x128xi32, #tpu.memory_space<vmem>>, vector<1x1x128xi32>
      tpu.vector_store %arg6[%c0_27, %c0_28, %c0_29], %35 {strides = array<i32>} : memref<1x1x128xi32, #tpu.memory_space<vmem>>, vector<1x1x128xi32>,
    } else {
    }
    return
  }
  func.func @transform_0(%arg0: i32, %arg1: i32, %arg2: i32) -> (i32, i32, i32) {
    %c0_i32 = arith.constant 0 : i32
    %c0_i32_0 = arith.constant 0 : i32
    return %arg0, %arg2, %c0_i32 : i32, i32, i32
  }
  func.func @transform_1(%arg0: i32, %arg1: i32, %arg2: i32) -> (i32, i32, i32) {
    %c0_i32 = arith.constant 0 : i32
    %c0_i32_0 = arith.constant 0 : i32
    return %arg0, %c0_i32, %arg1 : i32, i32, i32
  }
  func.func @transform_2(%arg0: i32, %arg1: i32, %arg2: i32) -> (i32, i32, i32) {
    %c0_i32 = arith.constant 0 : i32
    %c0_i32_0 = arith.constant 0 : i32
    return %arg0, %c0_i32, %arg1 : i32, i32, i32
  }
  func.func @transform_3(%arg0: i32, %arg1: i32, %arg2: i32) -> (i32, i32, i32) {
    %c0_i32 = arith.constant 0 : i32
    %c0_i32_0 = arith.constant 0 : i32
    return %arg0, %c0_i32, %arg1 : i32, i32, i32
  }
}

</mosaic_0001>

<bundles_post_ra>
// kernel: feature_matching_forward.10
= control target key start
LH: loop header
LB: loop body
LE: loop exit
PB: predicated region body
PF: predicated region fallthrough
CT: control target
= control target key end

     0   :  { %s1216_s12 = smov 0   ;;  %s1218_s13 = smov 0   ;;  %s1351_s0 = inlined_call_operand.vmem [shape: bf16[512,32], index: 0, kind: input, shape index: {}]   ;;  %s1352_s1 = inlined_call_operand.vmem [shape: bf16[32,128], index: 1, kind: input, shape index: {}]   ;;  %s1353_s2 = inlined_call_operand.vmem [shape: f32[1,128], index: 2, kind: input, shape index: {}]   ;;  %s1354_s3 = inlined_call_operand.vmem [shape: bf16[512,128], index: 3, kind: output, shape index: {}]  }
   0x1   :  { %s1220_s14 = smov 0  }
   0x2 LB: > { %s25_s15 = sadd.s32 1, %s1190_s13  ;;  %p871_p0 = scmp.ge.s32.totalorder %s1194_s14, 1  ;;  %s1194_s14 = sphi %s1220_s14, %s13_s14   ;;  %s1190_s13 = sphi %s1218_s13, %s1356_s13   ;;  %s1186_s12 = sphi %s1216_s12, %s1355_s12  }
   0x3   : > { %p27_p1 = scmp.ge.s32.totalorder %s25_s15, 2  ;;  %p169_p2 = scmp.lt.s32.totalorder %s1194_s14, 3 }
   0x5   : > { %s1358_s15 = smov (%p27_p1, %s25_s15), 0  ;;  %p170_p3 = pnand %p871_p0, %p169_p2 }
   0x6   : > { %v1154_v0 = vld [vmem:[%s1352_s1] sm:$0xff] (!%p170_p3)   ;;  %s872_s18 = sshll.u32 (!%p170_p3), %s1186_s12, 5  ;;  %v1155_v1 = vld [vmem:[%s1352_s1 + $0x8] sm:$0xff] (!%p170_p3)   ;;  %vm361_vm0 = vcmask (!%p170_p3), 261120  }
   0x7   : > { %173 = sbr.rel (%p170_p3) target bundleno = 266 (0x10a), region = 32  ;;  %p204_p4 = scmp.lt.s32.totalorder (!%p170_p3), %s872_s18, 63  ;;  %1090 = vmatprep.subr.bf16.mxu0 (!%p170_p3), %v1154_v0  ;;  %1126 = vmatprep.subr.bf16.mxu1 (!%p170_p3), %v1154_v0  ;;  %v1285_v18 = vld [vmem:[%s1353_s2] ss:$0 sm:$0xff] (!%p170_p3) }
   0x8   : > { %1091 = vmatpush3.bf16.msra.mxu0 (!%p170_p3), %v1154_v0  ;;  %1128 = vmatpush3.bf16.msra.mxu1 (!%p170_p3), %v1154_v0 }
   0x9   : > { %1092 = vmatprep.subr.bf16.mxu0 (!%p170_p3), %v1155_v1  ;;  %1127 = vmatprep.subr.bf16.mxu1 (!%p170_p3), %v1155_v1 }
   0xc   : > { %1093 = vmatpush3.bf16.msra.mxu0 (!%p170_p3), %v1155_v1  ;;  %1129 = vmatpush3.bf16.msra.mxu1 (!%p170_p3), %v1155_v1 }
   0xe   : > { %s1360_s18 = smov (!%p204_p4, %s872_s18), 63 }
   0xf   : > { %s873_s21 = sshll.u32 %s1360_s18, 2 }
  0x10   : > { %s1248_s24 = scalar_lea.vmem %s1351_s0, %s873_s21  ;;  %s1300_s29 = scalar_lea.vmem %s1354_s3, %s873_s21 }
  0x11   : > { %v1156_v2 = vld [vmem:[%s1248_s24] sm:$0xff]   ;;  %v1158_v4 = vld [vmem:[%s1248_s24 + $0x8] sm:$0xff]   ;;  %v1160_v6 = vld [vmem:[%s1248_s24 + $0x10] sm:$0xff]  }
  0x12   : > { %v1157_v3 = vld [vmem:[%s1248_s24 + $0x40] sm:$0xff]   ;;  %1094 = vmatprep.mubr.msk.bf16.mxu0 %vm361_vm0, %v1156_v2  ;;  %v1159_v5 = vld [vmem:[%s1248_s24 + $0x48] sm:$0xff]   ;;  %v1161_v7 = vld [vmem:[%s1248_s24 + $0x50] sm:$0xff]  }
  0x13   : > { %1110 = vmatprep.mubr.msk.bf16.mxu1 %vm361_vm0, %v1157_v3  ;;  %1095 = vmatmul.mubr.msk.bf16.vlgmr.msra.gmra.mrb[0].mxu0 %vm361_vm0, %v1158_v4  ;;  %v1162_v8 = vld [vmem:[%s1248_s24 + $0x18] sm:$0xff]   ;;  %v1164_v10 = vld [vmem:[%s1248_s24 + $0x20] sm:$0xff]   ;;  %v1166_v12 = vld [vmem:[%s1248_s24 + $0x28] sm:$0xff]  }
  0x14   : > { %1111 = vmatmul.mubr.msk.bf16.vlgmr.msra.gmra.mrb[0].mxu1 %vm361_vm0, %v1159_v5  ;;  %1098 = vmatprep.mubr.msk.bf16.mxu0 %vm361_vm0, %v1160_v6  ;;  %v1163_v9 = vld [vmem:[%s1248_s24 + $0x58] sm:$0xff]   ;;  %v1165_v11 = vld [vmem:[%s1248_s24 + $0x60] sm:$0xff]   ;;  %v1167_v13 = vld [vmem:[%s1248_s24 + $0x68] sm:$0xff]  }
  0x15   : > { %1114 = vmatprep.mubr.msk.bf16.mxu1 %vm361_vm0, %v1161_v7  ;;  %v1168_v14 = vld [vmem:[%s1248_s24 + $0x30] sm:$0xff]   ;;  %v1170_v16 = vld [vmem:[%s1248_s24 + $0x38] sm:$0xff]  }
  0x16   : > { %v1169_v15 = vld [vmem:[%s1248_s24 + $0x70] sm:$0xff]   ;;  %v1171_v17 = vld [vmem:[%s1248_s24 + $0x78] sm:$0xff]  }
  0x1b   : > { %1099 = vmatmul.mubr.msk.bf16.gmra.mrb[4].mxu0 %vm361_vm0, %v1162_v8 }
  0x1c   : > { %1115 = vmatmul.mubr.msk.bf16.gmra.mrb[4].mxu1 %vm361_vm0, %v1163_v9  ;;  %1102 = vmatprep.mubr.msk.bf16.mxu0 %vm361_vm0, %v1164_v10 }
  0x1d   : > { %1118 = vmatprep.mubr.msk.bf16.mxu1 %vm361_vm0, %v1165_v11 }
  0x23   : > { %1103 = vmatmul.mubr.msk.bf16.gmra.mrb[8].mxu0 %vm361_vm0, %v1166_v12 }
  0x24   : > { %1119 = vmatmul.mubr.msk.bf16.gmra.mrb[8].mxu1 %vm361_vm0, %v1167_v13  ;;  %1106 = vmatprep.mubr.msk.bf16.mxu0 %vm361_vm0, %v1168_v14 }
  0x25   : > { %1122 = vmatprep.mubr.msk.bf16.mxu1 %vm361_vm0, %v1169_v15 }
  0x2b   : > { %1107 = vmatmul.mubr.msk.bf16.gmra.mrb[12].mxu0 %vm361_vm0, %v1170_v16 }
  0x2c   : > { %1123 = vmatmul.mubr.msk.bf16.gmra.mrb[12].mxu1 %vm361_vm0, %v1171_v17 }
  0xe6   : > { %v1096_v19 = vpop.f32.mrb[0].mxu0 }
  0xe7   : > { %v453_v20 = vadd.f32 %v1096_v19, %v1285_v18  ;;  %v1112_v21 = vpop.f32.mrb[0].mxu1  ;;  %v444_v22 = vpop.f32.mrb[1].mxu0 }
  0xe8   : > { %v517_v23 = vadd.f32 %v1112_v21, %v1285_v18  ;;  %v445_v24 = vadd.f32 %v1285_v18, %v444_v22  ;;  %v508_v25 = vpop.f32.mrb[1].mxu1  ;;  %v1097_v26 = vpop.f32.mrb[2].mxu0 }
  0xe9   : > { %v509_v27 = vadd.f32 %v1285_v18, %v508_v25  ;;  %v456_v28 = vadd.f32 %v1097_v26, %v1285_v18  ;;  %v1113_v29 = vpop.f32.mrb[2].mxu1  ;;  %v447_v30 = vpop.f32.mrb[3].mxu0  ;;  %v573_v34 = vmax.f32 %v453_v20, 0.0 }
  0xea   : > { %v520_v31 = vadd.f32 %v1113_v29, %v1285_v18  ;;  %v448_v32 = vadd.f32 %v1285_v18, %v447_v30  ;;  %v511_v33 = vpop.f32.mrb[3].mxu1  ;;  %v589_v37 = vmax.f32 %v517_v23, 0.0  ;;  %v571_v38 = vmax.f32 %v445_v24, 0.0 }
  0xeb   : > { %v574_v35 = vmax.f32 %v456_v28, 0.0  ;;  %v512_v36 = vadd.f32 %v1285_v18, %v511_v33  ;;  %v587_v41 = vmax.f32 %v509_v27, 0.0 }
  0xec   : > { %v590_v39 = vmax.f32 %v520_v31, 0.0  ;;  %v572_v40 = vmax.f32 %v448_v32, 0.0 }
  0xed   : > { %v985_v42 = vpack.c.bf16 %v574_v35, %v573_v34  ;;  %v588_v43 = vmax.f32 %v512_v36, 0.0 }
  0xee   : > { %v1025_v44 = vpack.c.bf16 %v590_v39, %v589_v37  ;;  %v980_v45 = vpack.c.bf16 %v572_v40, %v571_v38  ;;  %v1100_v46 = vpop.f32.mrb[4].mxu0 }
  0xef   : > { %1057 = vst [vmem:[%s1300_s29 + $0x8] sm:$0xff] %v985_v42   ;;  %v1020_v47 = vpack.c.bf16 %v588_v43, %v587_v41  ;;  %v469_v48 = vadd.f32 %v1100_v46, %v1285_v18  ;;  %v1116_v49 = vpop.f32.mrb[4].mxu1  ;;  %v460_v50 = vpop.f32.mrb[5].mxu0 }
  0xf0   : > { %1065 = vst [vmem:[%s1300_s29 + $0x48] sm:$0xff] %v1025_v44   ;;  %981 = vst [vmem:[%s1300_s29] sm:$0xff] %v980_v45   ;;  %v533_v51 = vadd.f32 %v1116_v49, %v1285_v18  ;;  %v461_v52 = vadd.f32 %v1285_v18, %v460_v50  ;;  %v524_v53 = vpop.f32.mrb[5].mxu1  ;;  %v1101_v54 = vpop.f32.mrb[6].mxu0 }
  0xf1   : > { %1064 = vst [vmem:[%s1300_s29 + $0x40] sm:$0xff] %v1020_v47   ;;  %v525_v55 = vadd.f32 %v1285_v18, %v524_v53  ;;  %v472_v56 = vadd.f32 %v1101_v54, %v1285_v18  ;;  %v1117_v57 = vpop.f32.mrb[6].mxu1  ;;  %v463_v58 = vpop.f32.mrb[7].mxu0  ;;  %v577_v62 = vmax.f32 %v469_v48, 0.0 }
  0xf2   : > { %v536_v59 = vadd.f32 %v1117_v57, %v1285_v18  ;;  %v464_v60 = vadd.f32 %v1285_v18, %v463_v58  ;;  %v527_v61 = vpop.f32.mrb[7].mxu1  ;;  %v593_v1 = vmax.f32 %v533_v51, 0.0  ;;  %v575_v2 = vmax.f32 %v461_v52, 0.0 }
  0xf3   : > { %v578_v63 = vmax.f32 %v472_v56, 0.0  ;;  %v528_v0 = vadd.f32 %v1285_v18, %v527_v61  ;;  %v591_v5 = vmax.f32 %v525_v55, 0.0 }
  0xf4   : > { %v594_v3 = vmax.f32 %v536_v59, 0.0  ;;  %v576_v4 = vmax.f32 %v464_v60, 0.0 }
  0xf5   : > { %v995_v6 = vpack.c.bf16 %v578_v63, %v577_v62  ;;  %v592_v7 = vmax.f32 %v528_v0, 0.0 }
  0xf6   : > { %v1035_v8 = vpack.c.bf16 %v594_v3, %v593_v1  ;;  %v990_v9 = vpack.c.bf16 %v576_v4, %v575_v2  ;;  %v1104_v10 = vpop.f32.mrb[8].mxu0 }
  0xf7   : > { %1059 = vst [vmem:[%s1300_s29 + $0x18] sm:$0xff] %v995_v6   ;;  %v1030_v11 = vpack.c.bf16 %v592_v7, %v591_v5  ;;  %v485_v12 = vadd.f32 %v1104_v10, %v1285_v18  ;;  %v1120_v13 = vpop.f32.mrb[8].mxu1  ;;  %v476_v14 = vpop.f32.mrb[9].mxu0 }
  0xf8   : > { %1067 = vst [vmem:[%s1300_s29 + $0x58] sm:$0xff] %v1035_v8   ;;  %1058 = vst [vmem:[%s1300_s29 + $0x10] sm:$0xff] %v990_v9   ;;  %v549_v15 = vadd.f32 %v1120_v13, %v1285_v18  ;;  %v477_v16 = vadd.f32 %v1285_v18, %v476_v14  ;;  %v540_v17 = vpop.f32.mrb[9].mxu1  ;;  %v1105_v19 = vpop.f32.mrb[10].mxu0 }
  0xf9   : > { %1066 = vst [vmem:[%s1300_s29 + $0x50] sm:$0xff] %v1030_v11   ;;  %v541_v20 = vadd.f32 %v1285_v18, %v540_v17  ;;  %v488_v21 = vadd.f32 %v1105_v19, %v1285_v18  ;;  %v1121_v22 = vpop.f32.mrb[10].mxu1  ;;  %v479_v23 = vpop.f32.mrb[11].mxu0  ;;  %v581_v27 = vmax.f32 %v485_v12, 0.0 }
  0xfa   : > { %v552_v24 = vadd.f32 %v1121_v22, %v1285_v18  ;;  %v480_v25 = vadd.f32 %v1285_v18, %v479_v23  ;;  %v543_v26 = vpop.f32.mrb[11].mxu1  ;;  %v597_v30 = vmax.f32 %v549_v15, 0.0  ;;  %v579_v31 = vmax.f32 %v477_v16, 0.0 }
  0xfb   : > { %v582_v28 = vmax.f32 %v488_v21, 0.0  ;;  %v544_v29 = vadd.f32 %v1285_v18, %v543_v26  ;;  %v595_v34 = vmax.f32 %v541_v20, 0.0 }
  0xfc   : > { %v598_v32 = vmax.f32 %v552_v24, 0.0  ;;  %v580_v33 = vmax.f32 %v480_v25, 0.0 }
  0xfd   : > { %v1005_v35 = vpack.c.bf16 %v582_v28, %v581_v27  ;;  %v596_v36 = vmax.f32 %v544_v29, 0.0 }
  0xfe   : > { %v1045_v37 = vpack.c.bf16 %v598_v32, %v597_v30  ;;  %v1000_v38 = vpack.c.bf16 %v580_v33, %v579_v31  ;;  %v1108_v39 = vpop.f32.mrb[12].mxu0 }
  0xff   : > { %1061 = vst [vmem:[%s1300_s29 + $0x28] sm:$0xff] %v1005_v35   ;;  %v1040_v40 = vpack.c.bf16 %v596_v36, %v595_v34  ;;  %v501_v41 = vadd.f32 %v1108_v39, %v1285_v18  ;;  %v1124_v42 = vpop.f32.mrb[12].mxu1  ;;  %v492_v43 = vpop.f32.mrb[13].mxu0 }
 0x100   : > { %1069 = vst [vmem:[%s1300_s29 + $0x68] sm:$0xff] %v1045_v37   ;;  %1060 = vst [vmem:[%s1300_s29 + $0x20] sm:$0xff] %v1000_v38   ;;  %v565_v44 = vadd.f32 %v1124_v42, %v1285_v18  ;;  %v493_v45 = vadd.f32 %v1285_v18, %v492_v43  ;;  %v556_v46 = vpop.f32.mrb[13].mxu1  ;;  %v1109_v47 = vpop.f32.mrb[14].mxu0 }
 0x101   : > { %1068 = vst [vmem:[%s1300_s29 + $0x60] sm:$0xff] %v1040_v40   ;;  %v557_v48 = vadd.f32 %v1285_v18, %v556_v46  ;;  %v504_v49 = vadd.f32 %v1109_v47, %v1285_v18  ;;  %v1125_v50 = vpop.f32.mrb[14].mxu1  ;;  %v495_v51 = vpop.f32.mrb[15].mxu0  ;;  %v585_v55 = vmax.f32 %v501_v41, 0.0 }
 0x102   : > { %v568_v52 = vadd.f32 %v1125_v50, %v1285_v18  ;;  %v496_v53 = vadd.f32 %v1285_v18, %v495_v51  ;;  %v559_v54 = vpop.f32.mrb[15].mxu1  ;;  %v601_v58 = vmax.f32 %v565_v44, 0.0  ;;  %v583_v59 = vmax.f32 %v493_v45, 0.0 }
 0x103   : > { %v586_v56 = vmax.f32 %v504_v49, 0.0  ;;  %v560_v57 = vadd.f32 %v1285_v18, %v559_v54  ;;  %v599_v62 = vmax.f32 %v557_v48, 0.0 }
 0x104   : > { %v602_v60 = vmax.f32 %v568_v52, 0.0  ;;  %v584_v61 = vmax.f32 %v496_v53, 0.0 }
 0x105   : > { %v1015_v63 = vpack.c.bf16 %v586_v56, %v585_v55  ;;  %v600_v0 = vmax.f32 %v560_v57, 0.0 }
 0x106   : > { %v1055_v1 = vpack.c.bf16 %v602_v60, %v601_v58  ;;  %v1010_v2 = vpack.c.bf16 %v584_v61, %v583_v59 }
 0x107   : > { %1063 = vst [vmem:[%s1300_s29 + $0x38] sm:$0xff] %v1015_v63   ;;  %v1050_v3 = vpack.c.bf16 %v600_v0, %v599_v62 }
 0x108   : > { %1071 = vst [vmem:[%s1300_s29 + $0x78] sm:$0xff] %v1055_v1   ;;  %1062 = vst [vmem:[%s1300_s29 + $0x30] sm:$0xff] %v1010_v2  }
 0x109   : > { %1070 = vst [vmem:[%s1300_s29 + $0x70] sm:$0xff] %v1050_v3  }
 0x10a PF: > { %s13_s14 = sadd.s32 1, %s1194_s14   ;;  %s1355_s12 = smov %s1190_s13 }
 0x10b   : > { %p10_p5 = scmp.ge.s32.totalorder %s13_s14, 4   ;;  %s1356_s13 = smov %s1358_s15 }
 0x10d   :  { %12 = sbr.rel (!%p10_p5) target bundleno = 2 (0x2), region = 68 }

// kernel: feature_matching_forward.11
= control target key start
LH: loop header
LB: loop body
LE: loop exit
PB: predicated region body
PF: predicated region fallthrough
CT: control target
= control target key end

     0   :  { %s2668_s12 = smov 0   ;;  %s2670_s13 = smov 0   ;;  %s3077_s0 = inlined_call_operand.vmem [shape: bf16[512,576], index: 0, kind: input, shape index: {}]   ;;  %s3078_s1 = inlined_call_operand.vmem [shape: bf16[576,128], index: 1, kind: input, shape index: {}]   ;;  %s3079_s2 = inlined_call_operand.vmem [shape: f32[1,128], index: 2, kind: input, shape index: {}]   ;;  %s3080_s3 = inlined_call_operand.vmem [shape: bf16[512,128], index: 3, kind: output, shape index: {}]  }
   0x1   :  { %s2672_s14 = smov 0  }
   0x2 LB: > { %s25_s15 = sadd.s32 1, %s2642_s13  ;;  %p1852_p0 = scmp.ge.s32.totalorder %s2646_s14, 1  ;;  %s2646_s14 = sphi %s2672_s14, %s13_s14   ;;  %s2642_s13 = sphi %s2670_s13, %s3082_s13   ;;  %s2638_s12 = sphi %s2668_s12, %s3081_s12  }
   0x3   : > { %p27_p1 = scmp.ge.s32.totalorder %s25_s15, 2  ;;  %p170_p2 = scmp.lt.s32.totalorder %s2646_s14, 3 }
   0x5   : > { %s3084_s15 = smov (%p27_p1, %s25_s15), 0  ;;  %p171_p3 = pnand %p1852_p0, %p170_p2 }
   0x6   : > { %v2476_v0 = vld [vmem:[%s3078_s1 + $0x40] sm:$0xff] (!%p171_p3)   ;;  %s1853_s18 = sshll.u32 (!%p171_p3), %s2638_s12, 5  ;;  %v2478_v2 = vld [vmem:[%s3078_s1 + $0x48] sm:$0xff] (!%p171_p3)   ;;  %v2480_v4 = vld [vmem:[%s3078_s1 + $0x50] sm:$0xff] (!%p171_p3)   ;;  %vm1020_vm0 = vcmask (!%p171_p3), 523264  }
   0x7   : > { %174 = sbr.rel (%p171_p3) target bundleno = 417 (0x1a1), region = 32  ;;  %v2477_v1 = vld [vmem:[%s3078_s1] sm:$0xff] (!%p171_p3)   ;;  %2151 = vmatprep.subr.bf16.mxu0 (!%p171_p3), %v2476_v0  ;;  %2435 = vmatprep.subr.bf16.mxu1 (!%p171_p3), %v2476_v0  ;;  %p206_p4 = scmp.lt.s32.totalorder (!%p171_p3), %s1853_s18, 63  ;;  %v2479_v3 = vld [vmem:[%s3078_s1 + $0x8] sm:$0xff] (!%p171_p3)   ;;  %v2481_v5 = vld [vmem:[%s3078_s1 + $0x10] sm:$0xff] (!%p171_p3)  }
   0x8   : > { %2152 = vmatpush3.bf16.msra.mxu0 (!%p171_p3), %v2477_v1  ;;  %2443 = vmatpush3.bf16.msra.mxu1 (!%p171_p3), %v2477_v1  ;;  %v2482_v6 = vld [vmem:[%s3078_s1 + $0x58] sm:$0xff] (!%p171_p3)   ;;  %v2484_v8 = vld [vmem:[%s3078_s1 + $0x60] sm:$0xff] (!%p171_p3)   ;;  %v2486_v10 = vld [vmem:[%s3078_s1 + $0x68] sm:$0xff] (!%p171_p3)  }
   0x9   : > { %2153 = vmatprep.subr.bf16.mxu0 (!%p171_p3), %v2478_v2  ;;  %2436 = vmatprep.subr.bf16.mxu1 (!%p171_p3), %v2478_v2  ;;  %v2483_v7 = vld [vmem:[%s3078_s1 + $0x18] sm:$0xff] (!%p171_p3)   ;;  %v2485_v9 = vld [vmem:[%s3078_s1 + $0x20] sm:$0xff] (!%p171_p3)   ;;  %v2487_v13 = vld [vmem:[%s3078_s1 + $0x28] sm:$0xff] (!%p171_p3)  }
   0xa   : > { %v2488_v14 = vld [vmem:[%s3078_s1 + $0x70] sm:$0xff] (!%p171_p3)   ;;  %v2490_v16 = vld [vmem:[%s3078_s1 + $0x78] sm:$0xff] (!%p171_p3)   ;;  %v2498_v18 = vld [vmem:[%s3078_s1 + $0xc0] sm:$0xff] (!%p171_p3)  }
   0xb   : > { %v2489_v15 = vld [vmem:[%s3078_s1 + $0x30] sm:$0xff] (!%p171_p3)   ;;  %v2491_v17 = vld [vmem:[%s3078_s1 + $0x38] sm:$0xff] (!%p171_p3)   ;;  %v2501_v19 = vld [vmem:[%s3078_s1 + $0x100] sm:$0xff] (!%p171_p3)  }
   0xc   : > { %2154 = vmatpush3.bf16.msra.mxu0 (!%p171_p3), %v2479_v3  ;;  %2444 = vmatpush3.bf16.msra.mxu1 (!%p171_p3), %v2479_v3  ;;  %v2499_v22 = vld [vmem:[%s3078_s1 + $0x80] sm:$0xff] (!%p171_p3)   ;;  %v2500_v23 = vld [vmem:[%s3078_s1 + $0xc8] sm:$0xff] (!%p171_p3)   ;;  %v2509_v28 = vld [vmem:[%s3078_s1 + $0xd0] sm:$0xff] (!%p171_p3)  }
   0xd   : > { %2155 = vmatprep.subr.bf16.mxu0 (!%p171_p3), %v2480_v4  ;;  %2437 = vmatprep.subr.bf16.mxu1 (!%p171_p3), %v2480_v4  ;;  %v2502_v26 = vld [vmem:[%s3078_s1 + $0x88] sm:$0xff] (!%p171_p3)   ;;  %v2510_v30 = vld [vmem:[%s3078_s1 + $0x90] sm:$0xff] (!%p171_p3)   ;;  %v2511_v31 = vld [vmem:[%s3078_s1 + $0xd8] sm:$0xff] (!%p171_p3)  }
   0xe   : > { %s3086_s18 = smov (!%p206_p4, %s1853_s18), 63  ;;  %v2512_v34 = vld [vmem:[%s3078_s1 + $0x98] sm:$0xff]   ;;  %v2532_v35 = vld [vmem:[%s3078_s1 + $0x108] sm:$0xff]   ;;  %v2519_v37 = vld [vmem:[%s3078_s1 + $0xe0] sm:$0xff]  }
   0xf   : > { %s2451_s4 = smul.u32 20, %s3086_s18  ;;  %v2520_v39 = vld [vmem:[%s3078_s1 + $0xa0] sm:$0xff]   ;;  %v2521_v40 = vld [vmem:[%s3078_s1 + $0xe8] sm:$0xff]   ;;  %v2529_v46 = vld [vmem:[%s3078_s1 + $0xf0] sm:$0xff]   ;;  %s1856_s27 = sshll.u32 %s3086_s18, 2 }
  0x10   : > { %2156 = vmatpush3.bf16.msra.mxu0 %v2481_v5  ;;  %2445 = vmatpush3.bf16.msra.mxu1 %v2481_v5  ;;  %v2522_v43 = vld [vmem:[%s3078_s1 + $0xa8] sm:$0xff]   ;;  %v2552_v47 = vld [vmem:[%s3078_s1 + $0x110] sm:$0xff]   ;;  %v2531_v49 = vld [vmem:[%s3078_s1 + $0xf8] sm:$0xff]   ;;  %s2994_s30 = scalar_lea.vmem %s3080_s3, %s1856_s27 }
  0x11   : > { %2157 = vmatprep.subr.bf16.mxu0 %v2482_v6  ;;  %2438 = vmatprep.subr.bf16.mxu1 %v2482_v6  ;;  %s2719_s11 = scalar_lea.vmem %s3077_s0, %s2451_s4  ;;  %v2530_v48 = vld [vmem:[%s3078_s1 + $0xb0] sm:$0xff]   ;;  %v2533_v52 = vld [vmem:[%s3078_s1 + $0xb8] sm:$0xff]  }
  0x12   : > { %v2494_v11 = vld [vmem:[%s2719_s11 + $0x4] ss:$20 sps:$4 sm:$0xff]   ;;  %v2492_v20 = vld [vmem:[%s2719_s11] ss:$20 sps:$4 sm:$0xff]   ;;  %v2507_v27 = vld [vmem:[%s2719_s11 + $0x28] ss:$20 sps:$4 sm:$0xff]  }
  0x13   : > { %v2497_v12 = vld [vmem:[%s2719_s11 + $0x1e4] ss:$20 sps:$4 sm:$0xff]   ;;  %1101 = vmatprep.mubr.bf16.mxu0 %v2494_v11  ;;  %v2495_v21 = vld [vmem:[%s2719_s11 + $0x1e0] ss:$20 sps:$4 sm:$0xff]   ;;  %v2508_v29 = vld [vmem:[%s2719_s11 + $0x208] ss:$20 sps:$4 sm:$0xff]  }
  0x14   : > { %2158 = vmatpush3.bf16.msra.mxu0 %v2483_v7  ;;  %2446 = vmatpush3.bf16.msra.mxu1 %v2483_v7  ;;  %v2503_v24 = vld [vmem:[%s2719_s11 + $0x2c] ss:$20 sps:$4 sm:$0xff]   ;;  %v2513_v32 = vld [vmem:[%s2719_s11 + $0x54] ss:$20 sps:$4 sm:$0xff]   ;;  %v2517_v36 = vld [vmem:[%s2719_s11 + $0x50] ss:$20 sps:$4 sm:$0xff]  }
  0x15   : > { %2159 = vmatprep.subr.bf16.mxu0 %v2484_v8  ;;  %2439 = vmatprep.subr.bf16.mxu1 %v2484_v8  ;;  %v2505_v25 = vld [vmem:[%s2719_s11 + $0x20c] ss:$20 sps:$4 sm:$0xff]   ;;  %v2515_v33 = vld [vmem:[%s2719_s11 + $0x234] ss:$20 sps:$4 sm:$0xff]   ;;  %v2518_v38 = vld [vmem:[%s2719_s11 + $0x230] ss:$20 sps:$4 sm:$0xff]  }
  0x16   : > { %1197 = vmatprep.mubr.bf16.mxu1 %v2497_v12  ;;  %v2523_v41 = vld [vmem:[%s2719_s11 + $0x7c] ss:$20 sps:$4 sm:$0xff]   ;;  %v2527_v44 = vld [vmem:[%s2719_s11 + $0x78] ss:$20 sps:$4 sm:$0xff]   ;;  %v2539_v54 = vld [vmem:[%s2719_s11 + $0xa0] ss:$20 sps:$4 sm:$0xff]  }
  0x17   : > { %v2525_v42 = vld [vmem:[%s2719_s11 + $0x25c] ss:$20 sps:$4 sm:$0xff]   ;;  %v2528_v45 = vld [vmem:[%s2719_s11 + $0x258] ss:$20 sps:$4 sm:$0xff]   ;;  %v2542_v57 = vld [vmem:[%s2719_s11 + $0x34] ss:$20 sps:$4 sm:$0xff]  }
  0x18   : > { %2160 = vmatpush3.bf16.msra.mxu0 %v2485_v9  ;;  %2447 = vmatpush3.bf16.msra.mxu1 %v2485_v9  ;;  %v2534_v50 = vld [vmem:[%s2719_s11 + $0xa4] ss:$20 sps:$4 sm:$0xff]   ;;  %v2538_v51 = vld [vmem:[%s2719_s11 + $0xc] ss:$20 sps:$4 sm:$0xff]   ;;  %v2536_v53 = vld [vmem:[%s2719_s11 + $0x8] ss:$20 sps:$4 sm:$0xff]  }
  0x19   : > { %2161 = vmatprep.subr.bf16.mxu0 %v2486_v10  ;;  %2440 = vmatprep.subr.bf16.mxu1 %v2486_v10  ;;  %v2540_v55 = vld [vmem:[%s2719_s11 + $0xcc] ss:$20 sps:$4 sm:$0xff]   ;;  %v2571_v56 = vld [vmem:[%s3078_s1 + $0x118] sm:$0xff]   ;;  %v2545_v59 = vld [vmem:[%s2719_s11 + $0x30] ss:$20 sps:$4 sm:$0xff]  }
  0x1a   : > { %v2544_v58 = vld [vmem:[%s2719_s11 + $0xc8] ss:$20 sps:$4 sm:$0xff]   ;;  %v2550_v62 = vld [vmem:[%s2719_s11 + $0xf0] ss:$20 sps:$4 sm:$0xff]   ;;  %v2551_v63 = vld [vmem:[%s2719_s11 + $0x58] ss:$20 sps:$4 sm:$0xff]  }
  0x1b   : > { %v2546_v60 = vld [vmem:[%s2719_s11 + $0xf4] ss:$20 sps:$4 sm:$0xff]   ;;  %v2548_v61 = vld [vmem:[%s2719_s11 + $0x5c] ss:$20 sps:$4 sm:$0xff]   ;;  %v2555_v1 = vld [vmem:[%s2719_s11 + $0x84] ss:$20 sps:$4 sm:$0xff]  }
  0x1c   : > { %2162 = vmatpush3.bf16.msra.mxu0 %v2487_v13  ;;  %2448 = vmatpush3.bf16.msra.mxu1 %v2487_v13  ;;  %v2553_v0 = vld [vmem:[%s2719_s11 + $0x11c] ss:$20 sps:$4 sm:$0xff]   ;;  %v2557_v2 = vld [vmem:[%s2719_s11 + $0x118] ss:$20 sps:$4 sm:$0xff]   ;;  %v2558_v3 = vld [vmem:[%s2719_s11 + $0x80] ss:$20 sps:$4 sm:$0xff]  }
  0x1d   : > { %2163 = vmatprep.subr.bf16.mxu0 %v2488_v14  ;;  %2441 = vmatprep.subr.bf16.mxu1 %v2488_v14  ;;  %v2559_v4 = vld [vmem:[%s2719_s11 + $0x144] ss:$20 sps:$4 sm:$0xff]   ;;  %v2561_v5 = vld [vmem:[%s2719_s11 + $0xac] ss:$20 sps:$4 sm:$0xff]   ;;  %v2564_v7 = vld [vmem:[%s2719_s11 + $0xa8] ss:$20 sps:$4 sm:$0xff]  }
  0x1e   : > { %v2563_v6 = vld [vmem:[%s2719_s11 + $0x140] ss:$20 sps:$4 sm:$0xff]   ;;  %v2569_v10 = vld [vmem:[%s2719_s11 + $0x168] ss:$20 sps:$4 sm:$0xff]   ;;  %v2570_v11 = vld [vmem:[%s2719_s11 + $0xd0] ss:$20 sps:$4 sm:$0xff]  }
  0x1f   : > { %v2565_v8 = vld [vmem:[%s2719_s11 + $0x16c] ss:$20 sps:$4 sm:$0xff]   ;;  %v2567_v9 = vld [vmem:[%s2719_s11 + $0xd4] ss:$20 sps:$4 sm:$0xff]   ;;  %v2574_v13 = vld [vmem:[%s2719_s11 + $0xfc] ss:$20 sps:$4 sm:$0xff]  }
  0x20   : > { %2164 = vmatpush3.bf16.msra.mxu0 %v2489_v15  ;;  %2449 = vmatpush3.bf16.msra.mxu1 %v2489_v15  ;;  %v2572_v12 = vld [vmem:[%s2719_s11 + $0x194] ss:$20 sps:$4 sm:$0xff]   ;;  %v2576_v14 = vld [vmem:[%s2719_s11 + $0x190] ss:$20 sps:$4 sm:$0xff]   ;;  %v2577_v15 = vld [vmem:[%s2719_s11 + $0xf8] ss:$20 sps:$4 sm:$0xff]  }
  0x21   : > { %2165 = vmatprep.subr.bf16.mxu0 %v2490_v16  ;;  %2442 = vmatprep.subr.bf16.mxu1 %v2490_v16  ;;  %v2578_v16 = vld [vmem:[%s2719_s11 + $0x1bc] ss:$20 sps:$4 sm:$0xff]  }
  0x24   : > { %2166 = vmatpush3.bf16.msra.mxu0 %v2491_v17  ;;  %2450 = vmatpush3.bf16.msra.mxu1 %v2491_v17  ;;  %v2580_v17 = vld [vmem:[%s2719_s11 + $0x124] ss:$20 sps:$4 sm:$0xff]  }
  0x25   : > { %2263 = vmatprep.subr.bf16.mxu1 %v2498_v18  ;;  %2395 = vmatprep.subr.bf16.mxu0 %v2501_v19  ;;  %v2582_v18 = vld [vmem:[%s2719_s11 + $0x1b8] ss:$20 sps:$4 sm:$0xff]  }
  0x27   : > { %1102 = vmatmul.mubr.bf16.vlgmr.msra.gmra.mrb[0].mxu0 %v2492_v20  ;;  %1198 = vmatmul.mubr.bf16.vlgmr.msra.gmra.mrb[0].mxu1 %v2495_v21  ;;  %v2584_v20 = vld [vmem:[%s2719_s11 + $0x14c] ss:$20 sps:$4 sm:$0xff]   ;;  %v2586_v21 = vld [vmem:[%s2719_s11 + $0x10] ss:$20 sps:$4 sm:$0xff]  }
  0x28   : > { %2264 = vmatpush3.bf16.msra.mxu1 %v2499_v22  ;;  %2396 = vmatpush3.bf16.msra.mxu0 %v2501_v19  ;;  %v2583_v19 = vld [vmem:[%s2719_s11 + $0x120] ss:$20 sps:$4 sm:$0xff]   ;;  %v2587_v22 = vld [vmem:[%s2719_s11 + $0x148] ss:$20 sps:$4 sm:$0xff]  }
  0x29   : > { %2265 = vmatprep.subr.bf16.mxu1 %v2500_v23  ;;  %1109 = vmatprep.mubr.bf16.mxu0 %v2503_v24  ;;  %v2588_v23 = vld [vmem:[%s2719_s11 + $0x38] ss:$20 sps:$4 sm:$0xff]   ;;  %v2589_v24 = vld [vmem:[%s2719_s11 + $0x174] ss:$20 sps:$4 sm:$0xff]  }
  0x2a   : > { %1205 = vmatprep.mubr.bf16.mxu1 %v2505_v25  ;;  %2397 = vmatprep.subr.bf16.mxu0 %v2532_v35  ;;  %v2591_v25 = vld [vmem:[%s2719_s11 + $0x60] ss:$20 sps:$4 sm:$0xff]  }
  0x2c   : > { %2266 = vmatpush3.bf16.msra.mxu1 %v2502_v26  ;;  %2398 = vmatpush3.bf16.msra.mxu0 %v2532_v35  ;;  %v2592_v26 = vld [vmem:[%s2719_s11 + $0x170] ss:$20 sps:$4 sm:$0xff]   ;;  %v2603_v35 = vld [vmem:[%s2719_s11 + $0x128] ss:$20 sps:$4 sm:$0xff]  }
  0x2d   : > { %2267 = vmatprep.subr.bf16.mxu1 %v2509_v28  ;;  %2399 = vmatprep.subr.bf16.mxu0 %v2552_v47  ;;  %v2594_v28 = vld [vmem:[%s2719_s11 + $0x19c] ss:$20 sps:$4 sm:$0xff]  }
  0x2f   : > { %1110 = vmatmul.mubr.bf16.gmra.mrb[4].mxu0 %v2507_v27  ;;  %1206 = vmatmul.mubr.bf16.gmra.mrb[4].mxu1 %v2508_v29  ;;  %v2593_v27 = vld [vmem:[%s2719_s11 + $0x88] ss:$20 sps:$4 sm:$0xff]   ;;  %v2596_v29 = vld [vmem:[%s2719_s11 + $0xb0] ss:$20 sps:$4 sm:$0xff]  }
  0x30   : > { %2268 = vmatpush3.bf16.msra.mxu1 %v2510_v30  ;;  %1117 = vmatprep.mubr.bf16.mxu0 %v2513_v32  ;;  %v2597_v30 = vld [vmem:[%s2719_s11 + $0x198] ss:$20 sps:$4 sm:$0xff]  }
  0x31   : > { %2269 = vmatprep.subr.bf16.mxu1 %v2511_v31  ;;  %1213 = vmatprep.mubr.bf16.mxu1 %v2515_v33  ;;  %v2598_v31 = vld [vmem:[%s2719_s11 + $0xd8] ss:$20 sps:$4 sm:$0xff]   ;;  %v2601_v33 = vld [vmem:[%s2719_s11 + $0x100] ss:$20 sps:$4 sm:$0xff]  }
  0x32   : > { %2400 = vmatpush3.bf16.msra.mxu0 %v2552_v47  ;;  %v2599_v32 = vld [vmem:[%s2719_s11 + $0x1c4] ss:$20 sps:$4 sm:$0xff]  }
  0x33   : > { %2401 = vmatprep.subr.bf16.mxu0 %v2571_v56  ;;  %v2618_v47 = vld [vmem:[%s2719_s11 + $0x218] ss:$20 sps:$4 sm:$0xff]  }
  0x34   : > { %2270 = vmatpush3.bf16.msra.mxu1 %v2512_v34  ;;  %v2602_v34 = vld [vmem:[%s2719_s11 + $0x1c0] ss:$20 sps:$4 sm:$0xff]  }
  0x35   : > { %2271 = vmatprep.subr.bf16.mxu1 %v2519_v37  ;;  %v2606_v37 = vld [vmem:[%s2719_s11 + $0x150] ss:$20 sps:$4 sm:$0xff]  }
  0x36   : > { %2402 = vmatpush3.bf16.msra.mxu0 %v2571_v56 }
  0x37   : > { %1118 = vmatmul.mubr.bf16.gmra.mrb[8].mxu0 %v2517_v36  ;;  %1214 = vmatmul.mubr.bf16.gmra.mrb[8].mxu1 %v2518_v38  ;;  %v2604_v36 = vld [vmem:[%s2719_s11 + $0x1ec] ss:$20 sps:$4 sm:$0xff]   ;;  %v2607_v38 = vld [vmem:[%s2719_s11 + $0x1e8] ss:$20 sps:$4 sm:$0xff]  }
  0x38   : > { %2272 = vmatpush3.bf16.msra.mxu1 %v2520_v39  ;;  %1125 = vmatprep.mubr.bf16.mxu0 %v2523_v41  ;;  %v2608_v39 = vld [vmem:[%s2719_s11 + $0x178] ss:$20 sps:$4 sm:$0xff]   ;;  %v2611_v41 = vld [vmem:[%s2719_s11 + $0x1a0] ss:$20 sps:$4 sm:$0xff]  }
  0x39   : > { %2273 = vmatprep.subr.bf16.mxu1 %v2521_v40  ;;  %1221 = vmatprep.mubr.bf16.mxu1 %v2525_v42  ;;  %v2609_v40 = vld [vmem:[%s2719_s11 + $0x214] ss:$20 sps:$4 sm:$0xff]   ;;  %v2612_v42 = vld [vmem:[%s2719_s11 + $0x210] ss:$20 sps:$4 sm:$0xff]  }
  0x3c   : > { %2274 = vmatpush3.bf16.msra.mxu1 %v2522_v43  ;;  %v2613_v43 = vld [vmem:[%s2719_s11 + $0x1c8] ss:$20 sps:$4 sm:$0xff]  }
  0x3d   : > { %2275 = vmatprep.subr.bf16.mxu1 %v2529_v46  ;;  %v2617_v46 = vld [vmem:[%s2719_s11 + $0x238] ss:$20 sps:$4 sm:$0xff]  }
  0x3f   : > { %1126 = vmatmul.mubr.bf16.gmra.mrb[12].mxu0 %v2527_v44  ;;  %1222 = vmatmul.mubr.bf16.gmra.mrb[12].mxu1 %v2528_v45  ;;  %v2614_v44 = vld [vmem:[%s2719_s11 + $0x23c] ss:$20 sps:$4 sm:$0xff]  }
  0x40   : > { %2276 = vmatpush3.bf16.msra.mxu1 %v2530_v48  ;;  %1133 = vmatprep.mubr.bf16.mxu0 %v2534_v50  ;;  %v2616_v45 = vld [vmem:[%s2719_s11 + $0x1f0] ss:$20 sps:$4 sm:$0xff]   ;;  %v2622_v50 = vld [vmem:[%s2719_s11 + $0x260] ss:$20 sps:$4 sm:$0xff]  }
  0x41   : > { %2277 = vmatprep.subr.bf16.mxu1 %v2531_v49  ;;  %1262 = vmatprep.mubr.bf16.mxu1 %v2538_v51  ;;  %v2619_v48 = vld [vmem:[%s2719_s11 + $0x264] ss:$20 sps:$4 sm:$0xff]   ;;  %v2621_v49 = vld [vmem:[%s2719_s11 + $0x240] ss:$20 sps:$4 sm:$0xff]   ;;  %v2623_v51 = vld [vmem:[%s2719_s11 + $0x268] ss:$20 sps:$4 sm:$0xff]  }
  0x44   : > { %2278 = vmatpush3.bf16.msra.mxu1 %v2533_v52 }
  0x47   : > { %1134 = vmatmul.mubr.bf16.gmra.mrb[16].mxu0 %v2539_v54  ;;  %1263 = vmatmul.mubr.bf16.vlgmr.msra.gmra.mrb[16].mxu1 %v2536_v53 }
  0x48   : > { %1141 = vmatprep.mubr.bf16.mxu0 %v2540_v55  ;;  %1270 = vmatprep.mubr.bf16.mxu1 %v2542_v57 }
  0x4f   : > { %1142 = vmatmul.mubr.bf16.gmra.mrb[20].mxu0 %v2544_v58  ;;  %1271 = vmatmul.mubr.bf16.gmra.mrb[20].mxu1 %v2545_v59 }
  0x50   : > { %1149 = vmatprep.mubr.bf16.mxu0 %v2546_v60  ;;  %1278 = vmatprep.mubr.bf16.mxu1 %v2548_v61 }
  0x57   : > { %1150 = vmatmul.mubr.bf16.gmra.mrb[24].mxu0 %v2550_v62  ;;  %1279 = vmatmul.mubr.bf16.gmra.mrb[24].mxu1 %v2551_v63 }
  0x58   : > { %1157 = vmatprep.mubr.bf16.mxu0 %v2553_v0  ;;  %1286 = vmatprep.mubr.bf16.mxu1 %v2555_v1 }
  0x5f   : > { %1158 = vmatmul.mubr.bf16.gmra.mrb[28].mxu0 %v2557_v2  ;;  %1287 = vmatmul.mubr.bf16.gmra.mrb[28].mxu1 %v2558_v3 }
  0x60   : > { %1165 = vmatprep.mubr.bf16.mxu0 %v2559_v4  ;;  %1294 = vmatprep.mubr.bf16.mxu1 %v2561_v5 }
  0x67   : > { %1166 = vmatmul.mubr.bf16.gmra.mrb[32].mxu0 %v2563_v6  ;;  %1295 = vmatmul.mubr.bf16.gmra.mrb[32].mxu1 %v2564_v7 }
  0x68   : > { %1173 = vmatprep.mubr.bf16.mxu0 %v2565_v8  ;;  %1302 = vmatprep.mubr.bf16.mxu1 %v2567_v9 }
  0x6f   : > { %1174 = vmatmul.mubr.bf16.gmra.mrb[36].mxu0 %v2569_v10  ;;  %1303 = vmatmul.mubr.bf16.gmra.mrb[36].mxu1 %v2570_v11 }
  0x70   : > { %1181 = vmatprep.mubr.bf16.mxu0 %v2572_v12  ;;  %1310 = vmatprep.mubr.bf16.mxu1 %v2574_v13 }
  0x77   : > { %1182 = vmatmul.mubr.bf16.gmra.mrb[40].mxu0 %v2576_v14  ;;  %1311 = vmatmul.mubr.bf16.gmra.mrb[40].mxu1 %v2577_v15 }
  0x78   : > { %1189 = vmatprep.mubr.bf16.mxu0 %v2578_v16  ;;  %1318 = vmatprep.mubr.bf16.mxu1 %v2580_v17 }
  0x7f   : > { %1190 = vmatmul.mubr.bf16.gmra.mrb[44].mxu0 %v2582_v18  ;;  %1319 = vmatmul.mubr.bf16.gmra.mrb[44].mxu1 %v2583_v19 }
  0x80   : > { %1326 = vmatprep.mubr.bf16.mxu1 %v2584_v20  ;;  %2403 = vmatprep.mubr.msk.bf16.mxu0 %vm1020_vm0, %v2586_v21 }
  0x87   : > { %1327 = vmatmul.mubr.bf16.gmra.mrb[48].mxu1 %v2587_v22  ;;  %2404 = vmatmul.mubr.msk.bf16.vlgmr.msra.gmra.mrb[48].mxu0 %vm1020_vm0, %v2588_v23 }
  0x88   : > { %1334 = vmatprep.mubr.bf16.mxu1 %v2589_v24  ;;  %2407 = vmatprep.mubr.msk.bf16.mxu0 %vm1020_vm0, %v2591_v25 }
  0x8f   : > { %1335 = vmatmul.mubr.bf16.gmra.mrb[52].mxu1 %v2592_v26  ;;  %2408 = vmatmul.mubr.msk.bf16.gmra.mrb[52].mxu0 %vm1020_vm0, %v2593_v27 }
  0x90   : > { %1342 = vmatprep.mubr.bf16.mxu1 %v2594_v28  ;;  %2411 = vmatprep.mubr.msk.bf16.mxu0 %vm1020_vm0, %v2596_v29 }
  0x97   : > { %1343 = vmatmul.mubr.bf16.gmra.mrb[56].mxu1 %v2597_v30  ;;  %2412 = vmatmul.mubr.msk.bf16.gmra.mrb[56].mxu0 %vm1020_vm0, %v2598_v31 }
  0x98   : > { %1350 = vmatprep.mubr.bf16.mxu1 %v2599_v32  ;;  %2415 = vmatprep.mubr.msk.bf16.mxu0 %vm1020_vm0, %v2601_v33 }
  0x9f   : > { %1351 = vmatmul.mubr.bf16.gmra.mrb[60].mxu1 %v2602_v34  ;;  %2416 = vmatmul.mubr.msk.bf16.gmra.mrb[60].mxu0 %vm1020_vm0, %v2603_v35 }
  0xa0   : > { %1358 = vmatprep.mubr.bf16.mxu1 %v2604_v36  ;;  %2419 = vmatprep.mubr.msk.bf16.mxu0 %vm1020_vm0, %v2606_v37 }
  0xa7   : > { %1359 = vmatmul.mubr.bf16.gmra.mrb[64].mxu1 %v2607_v38  ;;  %2420 = vmatmul.mubr.msk.bf16.gmra.mrb[64].mxu0 %vm1020_vm0, %v2608_v39  ;;  %v2917_v38 = vld [vmem:[%s3079_s2] ss:$0 sm:$0xff] }
  0xa8   : > { %1366 = vmatprep.mubr.bf16.mxu1 %v2609_v40  ;;  %2423 = vmatprep.mubr.msk.bf16.mxu0 %vm1020_vm0, %v2611_v41 }
  0xaf   : > { %1367 = vmatmul.mubr.bf16.gmra.mrb[68].mxu1 %v2612_v42  ;;  %2424 = vmatmul.mubr.msk.bf16.gmra.mrb[68].mxu0 %vm1020_vm0, %v2613_v43 }
  0xb0   : > { %1374 = vmatprep.mubr.bf16.mxu1 %v2614_v44  ;;  %2427 = vmatprep.mubr.msk.bf16.mxu0 %vm1020_vm0, %v2616_v45 }
  0xb7   : > { %1375 = vmatmul.mubr.bf16.gmra.mrb[72].mxu1 %v2617_v46  ;;  %2428 = vmatmul.mubr.msk.bf16.gmra.mrb[72].mxu0 %vm1020_vm0, %v2618_v47 }
  0xb8   : > { %1382 = vmatprep.mubr.bf16.mxu1 %v2619_v48  ;;  %2431 = vmatprep.mubr.msk.bf16.mxu0 %vm1020_vm0, %v2621_v49 }
  0xbf   : > { %1383 = vmatmul.mubr.bf16.gmra.mrb[76].mxu1 %v2622_v50  ;;  %2432 = vmatmul.mubr.msk.bf16.gmra.mrb[76].mxu0 %vm1020_vm0, %v2623_v51 }
  0xfa   : > { %v2239_v52 = vpop.f32.mrb[0].mxu1  ;;  %v2167_v53 = vpop.f32.mrb[0].mxu0 }
  0xfb   : > { %v2240_v54 = vpop.f32.mrb[1].mxu1  ;;  %v2168_v55 = vpop.f32.mrb[1].mxu0 }
  0xfc   : > { %v2898_v56 = vadd.f32 %v2240_v54, %v2239_v52  ;;  %v2242_v57 = vpop.f32.mrb[2].mxu1  ;;  %v2169_v58 = vadd.f32 %v2168_v55, %v2167_v53  ;;  %v2170_v59 = vpop.f32.mrb[2].mxu0 }
  0xfd   : > { %v2243_v60 = vpop.f32.mrb[3].mxu1  ;;  %v2171_v61 = vpop.f32.mrb[3].mxu0 }
  0xfe   : > { %v2900_v62 = vadd.f32 %v2243_v60, %v2242_v57  ;;  %v2172_v63 = vadd.f32 %v2171_v61, %v2170_v59  ;;  %v1104_v41 = vadd.f32 %v2169_v58, %v2917_v38 }
 0x100   : > { %v1107_v48 = vadd.f32 %v2172_v63, %v2917_v38 }
 0x102   : > { %v2245_v0 = vpop.f32.mrb[4].mxu1  ;;  %v2173_v1 = vpop.f32.mrb[4].mxu0 }
 0x103   : > { %v2246_v2 = vpop.f32.mrb[5].mxu1  ;;  %v2174_v3 = vpop.f32.mrb[5].mxu0 }
 0x104   : > { %v2902_v4 = vadd.f32 %v2246_v2, %v2245_v0  ;;  %v2248_v5 = vpop.f32.mrb[6].mxu1  ;;  %v2175_v6 = vadd.f32 %v2174_v3, %v2173_v1  ;;  %v2176_v7 = vpop.f32.mrb[6].mxu0 }
 0x105   : > { %v2249_v8 = vpop.f32.mrb[7].mxu1  ;;  %v2177_v9 = vpop.f32.mrb[7].mxu0 }
 0x106   : > { %v2904_v10 = vadd.f32 %v2249_v8, %v2248_v5  ;;  %v2178_v11 = vadd.f32 %v2177_v9, %v2176_v7  ;;  %v1112_v58 = vadd.f32 %v2175_v6, %v2917_v38 }
 0x108   : > { %v1115_v63 = vadd.f32 %v2178_v11, %v2917_v38 }
 0x10a   : > { %v2251_v12 = vpop.f32.mrb[8].mxu1  ;;  %v2179_v13 = vpop.f32.mrb[8].mxu0 }
 0x10b   : > { %v2252_v14 = vpop.f32.mrb[9].mxu1  ;;  %v2180_v15 = vpop.f32.mrb[9].mxu0 }
 0x10c   : > { %v2906_v16 = vadd.f32 %v2252_v14, %v2251_v12  ;;  %v2254_v17 = vpop.f32.mrb[10].mxu1  ;;  %v2181_v18 = vadd.f32 %v2180_v15, %v2179_v13  ;;  %v2182_v19 = vpop.f32.mrb[10].mxu0 }
 0x10d   : > { %v2255_v20 = vpop.f32.mrb[11].mxu1  ;;  %v2183_v21 = vpop.f32.mrb[11].mxu0 }
 0x10e   : > { %v2908_v22 = vadd.f32 %v2255_v20, %v2254_v17  ;;  %v2184_v23 = vadd.f32 %v2183_v21, %v2182_v19  ;;  %v1120_v6 = vadd.f32 %v2181_v18, %v2917_v38 }
 0x110   : > { %v1123_v11 = vadd.f32 %v2184_v23, %v2917_v38 }
 0x112   : > { %v2257_v24 = vpop.f32.mrb[12].mxu1  ;;  %v2185_v25 = vpop.f32.mrb[12].mxu0 }
 0x113   : > { %v2258_v26 = vpop.f32.mrb[13].mxu1  ;;  %v2186_v27 = vpop.f32.mrb[13].mxu0 }
 0x114   : > { %v2910_v28 = vadd.f32 %v2258_v26, %v2257_v24  ;;  %v2260_v29 = vpop.f32.mrb[14].mxu1  ;;  %v2187_v30 = vadd.f32 %v2186_v27, %v2185_v25  ;;  %v2188_v31 = vpop.f32.mrb[14].mxu0 }
 0x115   : > { %v2261_v32 = vpop.f32.mrb[15].mxu1  ;;  %v2189_v33 = vpop.f32.mrb[15].mxu0 }
 0x116   : > { %v2912_v34 = vadd.f32 %v2261_v32, %v2260_v29  ;;  %v2190_v35 = vadd.f32 %v2189_v33, %v2188_v31  ;;  %v1128_v18 = vadd.f32 %v2187_v30, %v2917_v38 }
 0x118   : > { %v1131_v23 = vadd.f32 %v2190_v35, %v2917_v38 }
 0x11a   : > { %v2279_v36 = vpop.f32.mrb[16].mxu1  ;;  %v2191_v37 = vpop.f32.mrb[16].mxu0 }
 0x11b   : > { %v2280_v39 = vpop.f32.mrb[17].mxu1  ;;  %v2192_v40 = vpop.f32.mrb[17].mxu0 }
 0x11c   : > { %v2281_v42 = vadd.f32 %v2280_v39, %v2279_v36  ;;  %v2282_v43 = vpop.f32.mrb[18].mxu1  ;;  %v2193_v44 = vadd.f32 %v2192_v40, %v2191_v37  ;;  %v2194_v45 = vpop.f32.mrb[18].mxu0 }
 0x11d   : > { %v2283_v46 = vpop.f32.mrb[19].mxu1  ;;  %v2195_v47 = vpop.f32.mrb[19].mxu0 }
 0x11e   : > { %v2284_v49 = vadd.f32 %v2283_v46, %v2282_v43  ;;  %v2196_v50 = vadd.f32 %v2195_v47, %v2194_v45  ;;  %v2921_v51 = vadd.f32 %v2281_v42, %v1104_v41  ;;  %v1136_v30 = vadd.f32 %v2193_v44, %v2917_v38 }
 0x120   : > { %v2923_v52 = vadd.f32 %v2284_v49, %v1107_v48  ;;  %v1139_v35 = vadd.f32 %v2196_v50, %v2917_v38 }
 0x122   : > { %v2285_v53 = vpop.f32.mrb[20].mxu1  ;;  %v2197_v54 = vpop.f32.mrb[20].mxu0 }
 0x123   : > { %v2286_v55 = vpop.f32.mrb[21].mxu1  ;;  %v2198_v57 = vpop.f32.mrb[21].mxu0 }
 0x124   : > { %v2287_v59 = vadd.f32 %v2286_v55, %v2285_v53  ;;  %v2288_v60 = vpop.f32.mrb[22].mxu1  ;;  %v2199_v61 = vadd.f32 %v2198_v57, %v2197_v54  ;;  %v2200_v0 = vpop.f32.mrb[22].mxu0 }
 0x125   : > { %v2289_v1 = vpop.f32.mrb[23].mxu1  ;;  %v2201_v2 = vpop.f32.mrb[23].mxu0 }
 0x126   : > { %v2290_v3 = vadd.f32 %v2289_v1, %v2288_v60  ;;  %v2202_v5 = vadd.f32 %v2201_v2, %v2200_v0  ;;  %v2927_v7 = vadd.f32 %v2287_v59, %v1112_v58  ;;  %v1144_v44 = vadd.f32 %v2199_v61, %v2917_v38 }
 0x128   : > { %v2929_v8 = vadd.f32 %v2290_v3, %v1115_v63 }
 0x12a   : > { %v2291_v9 = vpop.f32.mrb[24].mxu1  ;;  %v2203_v12 = vpop.f32.mrb[24].mxu0 }
 0x12b   : > { %v2292_v13 = vpop.f32.mrb[25].mxu1  ;;  %v2204_v14 = vpop.f32.mrb[25].mxu0 }
 0x12c   : > { %v2293_v15 = vadd.f32 %v2292_v13, %v2291_v9  ;;  %v2294_v17 = vpop.f32.mrb[26].mxu1  ;;  %v2205_v19 = vadd.f32 %v2204_v14, %v2203_v12  ;;  %v2206_v20 = vpop.f32.mrb[26].mxu0 }
 0x12d   : > { %v2295_v21 = vpop.f32.mrb[27].mxu1  ;;  %v2207_v24 = vpop.f32.mrb[27].mxu0 }
 0x12e   : > { %v2296_v25 = vadd.f32 %v2295_v21, %v2294_v17  ;;  %v2208_v26 = vadd.f32 %v2207_v24, %v2206_v20  ;;  %v2933_v27 = vadd.f32 %v2293_v15, %v1120_v6 }
 0x130   : > { %v2935_v29 = vadd.f32 %v2296_v25, %v1123_v11  ;;  %v1147_v11 = vadd.f32 %v2202_v5, %v2917_v38 }
 0x132   : > { %v2297_v31 = vpop.f32.mrb[28].mxu1  ;;  %v2209_v32 = vpop.f32.mrb[28].mxu0 }
 0x133   : > { %v2298_v33 = vpop.f32.mrb[29].mxu1  ;;  %v2210_v36 = vpop.f32.mrb[29].mxu0 }
 0x134   : > { %v2299_v37 = vadd.f32 %v2298_v33, %v2297_v31  ;;  %v2300_v39 = vpop.f32.mrb[30].mxu1  ;;  %v2211_v40 = vadd.f32 %v2210_v36, %v2209_v32  ;;  %v2212_v41 = vpop.f32.mrb[30].mxu0 }
 0x135   : > { %v2301_v42 = vpop.f32.mrb[31].mxu1  ;;  %v2213_v43 = vpop.f32.mrb[31].mxu0 }
 0x136   : > { %v2302_v45 = vadd.f32 %v2301_v42, %v2300_v39  ;;  %v2214_v46 = vadd.f32 %v2213_v43, %v2212_v41  ;;  %v2939_v47 = vadd.f32 %v2299_v37, %v1128_v18  ;;  %v1152_v39 = vadd.f32 %v2205_v19, %v2917_v38 }
 0x138   : > { %v2941_v48 = vadd.f32 %v2302_v45, %v1131_v23 }
 0x13a   : > { %v2303_v49 = vpop.f32.mrb[32].mxu1  ;;  %v2215_v53 = vpop.f32.mrb[32].mxu0 }
 0x13b   : > { %v2304_v54 = vpop.f32.mrb[33].mxu1  ;;  %v2216_v55 = vpop.f32.mrb[33].mxu0 }
 0x13c   : > { %v2305_v57 = vadd.f32 %v2304_v54, %v2303_v49  ;;  %v2306_v58 = vpop.f32.mrb[34].mxu1  ;;  %v2217_v59 = vadd.f32 %v2216_v55, %v2215_v53  ;;  %v2218_v60 = vpop.f32.mrb[34].mxu0  ;;  %v1155_v49 = vadd.f32 %v2208_v26, %v2917_v38 }
 0x13d   : > { %v2307_v0 = vpop.f32.mrb[35].mxu1  ;;  %v2219_v1 = vpop.f32.mrb[35].mxu0 }
 0x13e   : > { %v2308_v2 = vadd.f32 %v2307_v0, %v2306_v58  ;;  %v2945_v63 = vadd.f32 %v2219_v1, %v2218_v60  ;;  %v2947_v3 = vadd.f32 %v2305_v57, %v1136_v30  ;;  %v1160_v0 = vadd.f32 %v2211_v40, %v2917_v38 }
 0x140   : > { %v2949_v9 = vadd.f32 %v2308_v2, %v1139_v35 }
 0x142   : > { %v2309_v12 = vpop.f32.mrb[36].mxu1  ;;  %v2221_v13 = vpop.f32.mrb[36].mxu0 }
 0x143   : > { %v2310_v14 = vpop.f32.mrb[37].mxu1  ;;  %v2222_v6 = vpop.f32.mrb[37].mxu0 }
 0x144   : > { %v2311_v15 = vadd.f32 %v2310_v14, %v2309_v12  ;;  %v2312_v17 = vpop.f32.mrb[38].mxu1  ;;  %v2952_v20 = vadd.f32 %v2222_v6, %v2221_v13  ;;  %v2224_v21 = vpop.f32.mrb[38].mxu0  ;;  %v1163_v14 = vadd.f32 %v2214_v46, %v2917_v38 }
 0x145   : > { %v2313_v24 = vpop.f32.mrb[39].mxu1  ;;  %v2225_v50 = vpop.f32.mrb[39].mxu0 }
 0x146   : > { %v2314_v25 = vadd.f32 %v2313_v24, %v2312_v17  ;;  %v2955_v31 = vadd.f32 %v2225_v50, %v2224_v21  ;;  %v2957_v32 = vadd.f32 %v2311_v15, %v1144_v44 }
 0x148   : > { %v2959_v33 = vadd.f32 %v2314_v25, %v1147_v11  ;;  %v1168_v25 = vadd.f32 %v2217_v59, %v2917_v38 }
 0x14a   : > { %v2315_v36 = vpop.f32.mrb[40].mxu1  ;;  %v2227_v18 = vpop.f32.mrb[40].mxu0 }
 0x14b   : > { %v2316_v37 = vpop.f32.mrb[41].mxu1  ;;  %v2228_v61 = vpop.f32.mrb[41].mxu0 }
 0x14c   : > { %v2317_v41 = vadd.f32 %v2316_v37, %v2315_v36  ;;  %v2318_v42 = vpop.f32.mrb[42].mxu1  ;;  %v2962_v43 = vadd.f32 %v2228_v61, %v2227_v18  ;;  %v2230_v23 = vpop.f32.mrb[42].mxu0 }
 0x14d   : > { %v2319_v45 = vpop.f32.mrb[43].mxu1  ;;  %v2231_v5 = vpop.f32.mrb[43].mxu0 }
 0x14e   : > { %v2320_v53 = vadd.f32 %v2319_v45, %v2318_v42  ;;  %v2965_v54 = vadd.f32 %v2231_v5, %v2230_v23  ;;  %v2967_v55 = vadd.f32 %v2317_v41, %v1152_v39  ;;  %v1171_v42 = vadd.f32 %v2945_v63, %v2917_v38 }
 0x150   : > { %v2969_v30 = vadd.f32 %v2320_v53, %v1155_v49 }
 0x152   : > { %v2321_v57 = vpop.f32.mrb[44].mxu1  ;;  %v2233_v58 = vpop.f32.mrb[44].mxu0 }
 0x153   : > { %v2322_v60 = vpop.f32.mrb[45].mxu1  ;;  %v2234_v19 = vpop.f32.mrb[45].mxu0 }
 0x154   : > { %v2323_v1 = vadd.f32 %v2322_v60, %v2321_v57  ;;  %v2324_v35 = vpop.f32.mrb[46].mxu1  ;;  %v2972_v2 = vadd.f32 %v2234_v19, %v2233_v58  ;;  %v2236_v12 = vpop.f32.mrb[46].mxu0 }
 0x155   : > { %v2325_v13 = vpop.f32.mrb[47].mxu1  ;;  %v2237_v26 = vpop.f32.mrb[47].mxu0 }
 0x156   : > { %v2326_v6 = vadd.f32 %v2325_v13, %v2324_v35  ;;  %v2975_v44 = vadd.f32 %v2237_v26, %v2236_v12  ;;  %v2977_v15 = vadd.f32 %v2323_v1, %v1160_v0  ;;  %v1176_v0 = vadd.f32 %v2952_v20, %v2917_v38 }
 0x158   : > { %v2979_v17 = vadd.f32 %v2326_v6, %v1163_v14 }
 0x15a   : > { %v2327_v21 = vpop.f32.mrb[48].mxu1  ;;  %v2405_v24 = vpop.f32.mrb[48].mxu0 }
 0x15b   : > { %v1434_v40 = vadd.f32 %v2405_v24, %v2927_v7  ;;  %v2328_v50 = vpop.f32.mrb[49].mxu1  ;;  %v1425_v11 = vpop.f32.mrb[49].mxu0 }
 0x15c   : > { %v2329_v36 = vadd.f32 %v2328_v50, %v2327_v21  ;;  %v1426_v18 = vadd.f32 %v1425_v11, %v2921_v51  ;;  %v2330_v37 = vpop.f32.mrb[50].mxu1  ;;  %v2406_v46 = vpop.f32.mrb[50].mxu0  ;;  %v1179_v21 = vadd.f32 %v2955_v31, %v2917_v38 }
 0x15d   : > { %v1437_v61 = vadd.f32 %v2406_v46, %v2929_v8  ;;  %v2331_v39 = vpop.f32.mrb[51].mxu1  ;;  %v1428_v41 = vpop.f32.mrb[51].mxu0  ;;  %v1554_v5 = vmax.f32 %v1434_v40, 0.0 }
 0x15e   : > { %v2332_v23 = vadd.f32 %v2331_v39, %v2330_v37  ;;  %v1429_v7 = vadd.f32 %v1428_v41, %v2923_v52  ;;  %v2989_v45 = vadd.f32 %v2329_v36, %v1168_v25  ;;  %v1552_v49 = vmax.f32 %v1426_v18, 0.0 }
 0x15f   : > { %v1555_v59 = vmax.f32 %v1437_v61, 0.0 }
 0x160   : > { %v1553_v51 = vmax.f32 %v1429_v7, 0.0  ;;  %v2996_v8 = vadd.f32 %v2332_v23, %v1171_v42 }
 0x161   : > { %v2064_v53 = vpack.c.bf16 %v1555_v59, %v1554_v5 }
 0x162   : > { %v2059_v63 = vpack.c.bf16 %v1553_v51, %v1552_v49  ;;  %v2333_v57 = vpop.f32.mrb[52].mxu1  ;;  %v2409_v58 = vpop.f32.mrb[52].mxu0  ;;  %v1187_v49 = vadd.f32 %v2965_v54, %v2917_v38 }
 0x163   : > { %2136 = vst [vmem:[%s2994_s30 + $0x8] sm:$0xff] %v2064_v53   ;;  %v1450_v52 = vadd.f32 %v2409_v58, %v2939_v47  ;;  %v2334_v60 = vpop.f32.mrb[53].mxu1  ;;  %v1441_v19 = vpop.f32.mrb[53].mxu0 }
 0x164   : > { %2060 = vst [vmem:[%s2994_s30] sm:$0xff] %v2059_v63   ;;  %v2335_v1 = vadd.f32 %v2334_v60, %v2333_v57  ;;  %v1442_v35 = vadd.f32 %v1441_v19, %v2933_v27  ;;  %v2336_v12 = vpop.f32.mrb[54].mxu1  ;;  %v2410_v13 = vpop.f32.mrb[54].mxu0 }
 0x165   : > { %v1453_v26 = vadd.f32 %v2410_v13, %v2941_v48  ;;  %v2337_v14 = vpop.f32.mrb[55].mxu1  ;;  %v1444_v6 = vpop.f32.mrb[55].mxu0  ;;  %v1558_v20 = vmax.f32 %v1450_v52, 0.0 }
 0x166   : > { %v2338_v47 = vadd.f32 %v2337_v14, %v2336_v12  ;;  %v1445_v24 = vadd.f32 %v1444_v6, %v2935_v29  ;;  %v3008_v40 = vadd.f32 %v2335_v1, %v1176_v0  ;;  %v1556_v11 = vmax.f32 %v1442_v35, 0.0 }
 0x167   : > { %v1559_v50 = vmax.f32 %v1453_v26, 0.0  ;;  %v1184_v29 = vadd.f32 %v2962_v43, %v2917_v38 }
 0x168   : > { %v1557_v27 = vmax.f32 %v1445_v24, 0.0  ;;  %v3010_v25 = vadd.f32 %v2338_v47, %v1179_v21  ;;  %v1195_v47 = vadd.f32 %v2975_v44, %v2917_v38  ;;  %v1200_v44 = vadd.f32 %v2898_v56, %v2917_v38 }
 0x169   : > { %v2074_v36 = vpack.c.bf16 %v1559_v50, %v1558_v20 }
 0x16a   : > { %v2069_v48 = vpack.c.bf16 %v1557_v27, %v1556_v11  ;;  %v2339_v18 = vpop.f32.mrb[56].mxu1  ;;  %v2413_v37 = vpop.f32.mrb[56].mxu0 }
 0x16b   : > { %2138 = vst [vmem:[%s2994_s30 + $0x18] sm:$0xff] %v2074_v36   ;;  %v1466_v46 = vadd.f32 %v2413_v37, %v2957_v32  ;;  %v2340_v31 = vpop.f32.mrb[57].mxu1  ;;  %v1457_v61 = vpop.f32.mrb[57].mxu0 }
 0x16c   : > { %2137 = vst [vmem:[%s2994_s30 + $0x10] sm:$0xff] %v2069_v48   ;;  %v2341_v39 = vadd.f32 %v2340_v31, %v2339_v18  ;;  %v1458_v41 = vadd.f32 %v1457_v61, %v2947_v3  ;;  %v2342_v42 = vpop.f32.mrb[58].mxu1  ;;  %v2414_v23 = vpop.f32.mrb[58].mxu0 }
 0x16d   : > { %v1469_v7 = vadd.f32 %v2414_v23, %v2959_v33  ;;  %v2343_v5 = vpop.f32.mrb[59].mxu1  ;;  %v1460_v59 = vpop.f32.mrb[59].mxu0  ;;  %v1562_v43 = vmax.f32 %v1466_v46, 0.0 }
 0x16e   : > { %v2344_v32 = vadd.f32 %v2343_v5, %v2342_v42  ;;  %v1461_v51 = vadd.f32 %v1460_v59, %v2949_v9  ;;  %v3022_v53 = vadd.f32 %v2341_v39, %v1184_v29  ;;  %v1560_v57 = vmax.f32 %v1458_v41, 0.0 }
 0x16f   : > { %v1563_v63 = vmax.f32 %v1469_v7, 0.0  ;;  %v1192_v9 = vadd.f32 %v2972_v2, %v2917_v38  ;;  %v1203_v7 = vadd.f32 %v2900_v62, %v2917_v38  ;;  %v1208_v62 = vadd.f32 %v2902_v4, %v2917_v38 }
 0x170   : > { %v1561_v3 = vmax.f32 %v1461_v51, 0.0  ;;  %v3024_v58 = vadd.f32 %v2344_v32, %v1187_v49 }
 0x171   : > { %v2084_v52 = vpack.c.bf16 %v1563_v63, %v1562_v43 }
 0x172   : > { %v2079_v33 = vpack.c.bf16 %v1561_v3, %v1560_v57  ;;  %v2345_v60 = vpop.f32.mrb[60].mxu1  ;;  %v2417_v19 = vpop.f32.mrb[60].mxu0 }
 0x173   : > { %2140 = vst [vmem:[%s2994_s30 + $0x28] sm:$0xff] %v2084_v52   ;;  %v1482_v0 = vadd.f32 %v2417_v19, %v2977_v15  ;;  %v2346_v54 = vpop.f32.mrb[61].mxu1  ;;  %v1473_v1 = vpop.f32.mrb[61].mxu0 }
 0x174   : > { %2139 = vst [vmem:[%s2994_s30 + $0x20] sm:$0xff] %v2079_v33   ;;  %v2347_v35 = vadd.f32 %v2346_v54, %v2345_v60  ;;  %v1474_v12 = vadd.f32 %v1473_v1, %v2967_v55  ;;  %v2348_v13 = vpop.f32.mrb[62].mxu1  ;;  %v2418_v26 = vpop.f32.mrb[62].mxu0 }
 0x175   : > { %v1485_v14 = vadd.f32 %v2418_v26, %v2979_v17  ;;  %v2349_v6 = vpop.f32.mrb[63].mxu1  ;;  %v1476_v21 = vpop.f32.mrb[63].mxu0  ;;  %v1566_v2 = vmax.f32 %v1482_v0, 0.0 }
 0x176   : > { %v2350_v15 = vadd.f32 %v2349_v6, %v2348_v13  ;;  %v1477_v24 = vadd.f32 %v1476_v21, %v2969_v30  ;;  %v1353_v20 = vadd.f32 %v2347_v35, %v1192_v9  ;;  %v1564_v11 = vmax.f32 %v1474_v12, 0.0 }
 0x177   : > { %v1567_v50 = vmax.f32 %v1485_v14, 0.0  ;;  %v1211_v35 = vadd.f32 %v2904_v10, %v2917_v38  ;;  %v1216_v10 = vadd.f32 %v2906_v16, %v2917_v38 }
 0x178   : > { %v1565_v27 = vmax.f32 %v1477_v24, 0.0  ;;  %v1356_v55 = vadd.f32 %v2350_v15, %v1195_v47 }
 0x179   : > { %v2094_v36 = vpack.c.bf16 %v1567_v50, %v1566_v2 }
 0x17a   : > { %v2089_v48 = vpack.c.bf16 %v1565_v27, %v1564_v11  ;;  %v2351_v18 = vpop.f32.mrb[64].mxu1  ;;  %v2421_v17 = vpop.f32.mrb[64].mxu0 }
 0x17b   : > { %2142 = vst [vmem:[%s2994_s30 + $0x38] sm:$0xff] %v2094_v36   ;;  %v1498_v37 = vadd.f32 %v2421_v17, %v3008_v40  ;;  %v2352_v46 = vpop.f32.mrb[65].mxu1  ;;  %v1489_v31 = vpop.f32.mrb[65].mxu0 }
 0x17c   : > { %2141 = vst [vmem:[%s2994_s30 + $0x30] sm:$0xff] %v2089_v48   ;;  %v2353_v30 = vadd.f32 %v2352_v46, %v2351_v18  ;;  %v1490_v61 = vadd.f32 %v1489_v31, %v2989_v45  ;;  %v2354_v29 = vpop.f32.mrb[66].mxu1  ;;  %v2422_v39 = vpop.f32.mrb[66].mxu0 }
 0x17d   : > { %v1501_v41 = vadd.f32 %v2422_v39, %v3010_v25  ;;  %v2355_v42 = vpop.f32.mrb[67].mxu1  ;;  %v1492_v23 = vpop.f32.mrb[67].mxu0  ;;  %v1570_v56 = vmax.f32 %v1498_v37, 0.0  ;;  %v1219_v37 = vadd.f32 %v2908_v22, %v2917_v38 }
 0x17e   : > { %v2356_v40 = vadd.f32 %v2355_v42, %v2354_v29  ;;  %v1493_v5 = vadd.f32 %v1492_v23, %v2996_v8  ;;  %v1361_v59 = vadd.f32 %v2353_v30, %v1200_v44  ;;  %v1568_v32 = vmax.f32 %v1490_v61, 0.0 }
 0x17f   : > { %v1571_v49 = vmax.f32 %v1501_v41, 0.0 }
 0x180   : > { %v1569_v51 = vmax.f32 %v1493_v5, 0.0  ;;  %v1364_v45 = vadd.f32 %v2356_v40, %v1203_v7 }
 0x181   : > { %v2104_v43 = vpack.c.bf16 %v1571_v49, %v1570_v56 }
 0x182   : > { %v2099_v63 = vpack.c.bf16 %v1569_v51, %v1568_v32  ;;  %v2357_v57 = vpop.f32.mrb[68].mxu1  ;;  %v2425_v25 = vpop.f32.mrb[68].mxu0 }
 0x183   : > { %2144 = vst [vmem:[%s2994_s30 + $0x48] sm:$0xff] %v2104_v43   ;;  %v1514_v3 = vadd.f32 %v2425_v25, %v1353_v20  ;;  %v2358_v52 = vpop.f32.mrb[69].mxu1  ;;  %v1505_v33 = vpop.f32.mrb[69].mxu0  ;;  %v1227_v43 = vadd.f32 %v2912_v34, %v2917_v38 }
 0x184   : > { %2143 = vst [vmem:[%s2994_s30 + $0x40] sm:$0xff] %v2099_v63   ;;  %v2359_v8 = vadd.f32 %v2358_v52, %v2357_v57  ;;  %v1506_v60 = vadd.f32 %v1505_v33, %v3022_v53  ;;  %v2360_v19 = vpop.f32.mrb[70].mxu1  ;;  %v2426_v0 = vpop.f32.mrb[70].mxu0 }
 0x185   : > { %v1517_v54 = vadd.f32 %v2426_v0, %v1356_v55  ;;  %v2361_v1 = vpop.f32.mrb[71].mxu1  ;;  %v1508_v9 = vpop.f32.mrb[71].mxu0  ;;  %v1574_v14 = vmax.f32 %v1514_v3, 0.0 }
 0x186   : > { %v2362_v12 = vadd.f32 %v2361_v1, %v2360_v19  ;;  %v1509_v13 = vadd.f32 %v1508_v9, %v3024_v58  ;;  %v1369_v26 = vadd.f32 %v2359_v8, %v1208_v62  ;;  %v1572_v6 = vmax.f32 %v1506_v60, 0.0 }
 0x187   : > { %v1575_v4 = vmax.f32 %v1517_v54, 0.0 }
 0x188   : > { %v1573_v21 = vmax.f32 %v1509_v13, 0.0  ;;  %v1372_v47 = vadd.f32 %v2362_v12, %v1211_v35 }
 0x189   : > { %v2114_v53 = vpack.c.bf16 %v1575_v4, %v1574_v14 }
 0x18a   : > { %v2109_v15 = vpack.c.bf16 %v1573_v21, %v1572_v6  ;;  %v2363_v24 = vpop.f32.mrb[72].mxu1  ;;  %v2429_v20 = vpop.f32.mrb[72].mxu0 }
 0x18b   : > { %2146 = vst [vmem:[%s2994_s30 + $0x58] sm:$0xff] %v2114_v53   ;;  %v1530_v2 = vadd.f32 %v2429_v20, %v1369_v26  ;;  %v2364_v50 = vpop.f32.mrb[73].mxu1  ;;  %v1521_v11 = vpop.f32.mrb[73].mxu0 }
 0x18c   : > { %2145 = vst [vmem:[%s2994_s30 + $0x50] sm:$0xff] %v2109_v15   ;;  %v2365_v58 = vadd.f32 %v2364_v50, %v2363_v24  ;;  %v1522_v27 = vadd.f32 %v1521_v11, %v1361_v59  ;;  %v2366_v55 = vpop.f32.mrb[74].mxu1  ;;  %v2430_v36 = vpop.f32.mrb[74].mxu0  ;;  %v1224_v59 = vadd.f32 %v2910_v28, %v2917_v38 }
 0x18d   : > { %v1533_v48 = vadd.f32 %v2430_v36, %v1372_v47  ;;  %v2367_v18 = vpop.f32.mrb[75].mxu1  ;;  %v1524_v17 = vpop.f32.mrb[75].mxu0  ;;  %v1578_v30 = vmax.f32 %v1530_v2, 0.0 }
 0x18e   : > { %v2368_v46 = vadd.f32 %v2367_v18, %v2366_v55  ;;  %v1525_v31 = vadd.f32 %v1524_v17, %v1364_v45  ;;  %v1377_v44 = vadd.f32 %v2365_v58, %v1216_v10  ;;  %v1576_v29 = vmax.f32 %v1522_v27, 0.0 }
 0x18f   : > { %v1579_v61 = vmax.f32 %v1533_v48, 0.0 }
 0x190   : > { %v1577_v16 = vmax.f32 %v1525_v31, 0.0  ;;  %v1380_v39 = vadd.f32 %v2368_v46, %v1219_v37 }
 0x191   : > { %v2124_v41 = vpack.c.bf16 %v1579_v61, %v1578_v30 }
 0x192   : > { %v2119_v42 = vpack.c.bf16 %v1577_v16, %v1576_v29  ;;  %v2369_v23 = vpop.f32.mrb[76].mxu1  ;;  %v2433_v7 = vpop.f32.mrb[76].mxu0 }
 0x193   : > { %2148 = vst [vmem:[%s2994_s30 + $0x68] sm:$0xff] %v2124_v41   ;;  %v2370_v40 = vpop.f32.mrb[77].mxu1  ;;  %v1537_v5 = vpop.f32.mrb[77].mxu0 }
 0x194   : > { %2147 = vst [vmem:[%s2994_s30 + $0x60] sm:$0xff] %v2119_v42   ;;  %v2371_v22 = vadd.f32 %v2370_v40, %v2369_v23  ;;  %v1538_v56 = vadd.f32 %v1537_v5, %v1377_v44  ;;  %v2372_v49 = vpop.f32.mrb[78].mxu1  ;;  %v2434_v32 = vpop.f32.mrb[78].mxu0 }
 0x195   : > { %v2373_v51 = vpop.f32.mrb[79].mxu1  ;;  %v1540_v45 = vpop.f32.mrb[79].mxu0 }
 0x196   : > { %v1385_v63 = vadd.f32 %v2371_v22, %v1224_v59  ;;  %v2374_v57 = vadd.f32 %v2373_v51, %v2372_v49  ;;  %v1541_v25 = vadd.f32 %v1540_v45, %v1380_v39  ;;  %v1580_v52 = vmax.f32 %v1538_v56, 0.0 }
 0x198   : > { %v1546_v3 = vadd.f32 %v2433_v7, %v1385_v63  ;;  %v1388_v33 = vadd.f32 %v2374_v57, %v1227_v43  ;;  %v1581_v62 = vmax.f32 %v1541_v25, 0.0 }
 0x19a   : > { %v1549_v28 = vadd.f32 %v2434_v32, %v1388_v33  ;;  %v2129_v8 = vpack.c.bf16 %v1581_v62, %v1580_v52  ;;  %v1582_v60 = vmax.f32 %v1546_v3, 0.0 }
 0x19c   : > { %v1583_v19 = vmax.f32 %v1549_v28, 0.0  ;;  %2149 = vst [vmem:[%s2994_s30 + $0x70] sm:$0xff] %v2129_v8  }
 0x19e   : > { %v2134_v0 = vpack.c.bf16 %v1583_v19, %v1582_v60 }
 0x1a0   : > { %2150 = vst [vmem:[%s2994_s30 + $0x78] sm:$0xff] %v2134_v0  }
 0x1a1 PF: > { %s13_s14 = sadd.s32 1, %s2646_s14   ;;  %s3081_s12 = smov %s2642_s13 }
 0x1a2   : > { %p10_p5 = scmp.ge.s32.totalorder %s13_s14, 4   ;;  %s3082_s13 = smov %s3084_s15 }
 0x1a4   :  { %12 = sbr.rel (!%p10_p5) target bundleno = 2 (0x2), region = 68 }

// kernel: feature_matching_forward.12
= control target key start
LH: loop header
LB: loop body
LE: loop exit
PB: predicated region body
PF: predicated region fallthrough
CT: control target
= control target key end

     0   :  { %s1506_s18 = smov 0   ;;  %s1695_s0 = inlined_call_operand.vmem [shape: bf16[128,576], index: 0, kind: input, shape index: {}]   ;;  %s1696_s1 = inlined_call_operand.vmem [shape: bf16[576,128], index: 1, kind: input, shape index: {}]   ;;  %s1697_s2 = inlined_call_operand.vmem [shape: f32[1,128], index: 2, kind: input, shape index: {}]   ;;  %s1698_s3 = inlined_call_operand.vmem [shape: bf16[128,128], index: 3, kind: input, shape index: {}]   ;;  %s1699_s4 = inlined_call_operand.vmem [shape: f32[1,128], index: 4, kind: input, shape index: {}]   ;;  %s1700_s5 = inlined_call_operand.vmem [shape: bf16[128,128], index: 5, kind: output, shape index: {}]  }
   0x1 LB: > { %s1127_s19 = sadd.s32 4294967295, %s1474_s18   ;;  %p1131_p0 = scmp.ge.s32.totalorder %s1474_s18, 1  ;;  %s1474_s18 = sphi %s1506_s18, %s15_s18  }
   0x2   : > { %p189_p1 = scmp.lt.s32.totalorder %s1474_s18, 3 }
   0x4   : > { %p190_p2 = pnand %p1131_p0, %p189_p1 }
   0x5   : > { %v1396_v0 = vld [vmem:[%s1696_s1 + $0x40] sm:$0xff] (!%p190_p2)   ;;  %v1400_v4 = vld [vmem:[%s1696_s1 + $0x48] sm:$0xff] (!%p190_p2)   ;;  %v1404_v8 = vld [vmem:[%s1696_s1 + $0x50] sm:$0xff] (!%p190_p2)   ;;  %s1132_s25 = sshll.u32 (!%p190_p2), %s1127_s19, 3  ;;  %vm651_vm0 = vcmask (!%p190_p2), 523264  }
   0x6   : > { %193 = sbr.rel (%p190_p2) target bundleno = 523 (0x20b), region = 40  ;;  %v1397_v1 = vld [vmem:[%s1696_s1] sm:$0xff] (!%p190_p2)   ;;  %1247 = vmatprep.subr.bf16.mxu0 (!%p190_p2), %v1396_v0  ;;  %v1401_v5 = vld [vmem:[%s1696_s1 + $0x8] sm:$0xff] (!%p190_p2)   ;;  %v1405_v9 = vld [vmem:[%s1696_s1 + $0x10] sm:$0xff] (!%p190_p2)   ;;  %p219_p3 = scmp.lt.s32.totalorder (!%p190_p2), %s1132_s25, 15 }
   0x7   : > { %v1398_v2 = vld [vmem:[%s1696_s1 + $0xc0] sm:$0xff] (!%p190_p2)   ;;  %1248 = vmatpush3.bf16.msra.mxu0 (!%p190_p2), %v1397_v1  ;;  %v1402_v6 = vld [vmem:[%s1696_s1 + $0xc8] sm:$0xff] (!%p190_p2)   ;;  %v1406_v10 = vld [vmem:[%s1696_s1 + $0xd0] sm:$0xff] (!%p190_p2)  }
   0x8   : > { %v1399_v3 = vld [vmem:[%s1696_s1 + $0x80] sm:$0xff] (!%p190_p2)   ;;  %1287 = vmatprep.subr.bf16.mxu1 (!%p190_p2), %v1398_v2  ;;  %1249 = vmatprep.subr.bf16.mxu0 (!%p190_p2), %v1400_v4  ;;  %v1403_v7 = vld [vmem:[%s1696_s1 + $0x88] sm:$0xff] (!%p190_p2)   ;;  %v1407_v11 = vld [vmem:[%s1696_s1 + $0x90] sm:$0xff] (!%p190_p2)  }
   0x9   : > { %1288 = vmatpush3.bf16.msra.mxu1 (!%p190_p2), %v1399_v3  ;;  %v1408_v12 = vld [vmem:[%s1696_s1 + $0x58] sm:$0xff] (!%p190_p2)   ;;  %v1412_v16 = vld [vmem:[%s1696_s1 + $0x60] sm:$0xff] (!%p190_p2)   ;;  %v1416_v20 = vld [vmem:[%s1696_s1 + $0x68] sm:$0xff] (!%p190_p2)  }
   0xa   : > { %1289 = vmatprep.subr.bf16.mxu1 (!%p190_p2), %v1402_v6  ;;  %v1409_v13 = vld [vmem:[%s1696_s1 + $0x18] sm:$0xff] (!%p190_p2)   ;;  %v1413_v17 = vld [vmem:[%s1696_s1 + $0x20] sm:$0xff] (!%p190_p2)   ;;  %v1417_v21 = vld [vmem:[%s1696_s1 + $0x28] sm:$0xff] (!%p190_p2)  }
   0xb   : > { %1250 = vmatpush3.bf16.msra.mxu0 (!%p190_p2), %v1401_v5  ;;  %v1410_v14 = vld [vmem:[%s1696_s1 + $0xd8] sm:$0xff] (!%p190_p2)   ;;  %v1414_v18 = vld [vmem:[%s1696_s1 + $0xe0] sm:$0xff] (!%p190_p2)   ;;  %v1418_v22 = vld [vmem:[%s1696_s1 + $0xe8] sm:$0xff] (!%p190_p2)  }
   0xc   : > { %1251 = vmatprep.subr.bf16.mxu0 (!%p190_p2), %v1404_v8  ;;  %v1411_v15 = vld [vmem:[%s1696_s1 + $0x98] sm:$0xff] (!%p190_p2)   ;;  %v1415_v19 = vld [vmem:[%s1696_s1 + $0xa0] sm:$0xff] (!%p190_p2)   ;;  %v1419_v23 = vld [vmem:[%s1696_s1 + $0xa8] sm:$0xff] (!%p190_p2)  }
   0xd   : > { %1290 = vmatpush3.bf16.msra.mxu1 %v1403_v7  ;;  %s1702_s25 = smov (!%p219_p3, %s1132_s25), 15  ;;  %v1420_v24 = vld [vmem:[%s1696_s1 + $0x70] sm:$0xff]   ;;  %v1424_v28 = vld [vmem:[%s1696_s1 + $0x78] sm:$0xff]   ;;  %v1431_v34 = vld [vmem:[%s1696_s1 + $0x100] sm:$0xff]  }
   0xe   : > { %1291 = vmatprep.subr.bf16.mxu1 %v1406_v10  ;;  %s1387_s24 = smul.u32 20, %s1702_s25  ;;  %v1421_v25 = vld [vmem:[%s1696_s1 + $0x30] sm:$0xff]   ;;  %v1425_v29 = vld [vmem:[%s1696_s1 + $0x38] sm:$0xff]   ;;  %v1438_v38 = vld [vmem:[%s1696_s1 + $0x108] sm:$0xff]  }
   0xf   : > { %1252 = vmatpush3.bf16.msra.mxu0 %v1405_v9  ;;  %v1422_v26 = vld [vmem:[%s1696_s1 + $0xf0] sm:$0xff]   ;;  %v1426_v30 = vld [vmem:[%s1696_s1 + $0xf8] sm:$0xff]   ;;  %v1460_v56 = vld [vmem:[%s1698_s3] sm:$0xff]  }
  0x10   : > { %1253 = vmatprep.subr.bf16.mxu0 %v1408_v12  ;;  %v1423_v27 = vld [vmem:[%s1696_s1 + $0xb0] sm:$0xff]   ;;  %s1609_s10 = scalar_lea.vmem %s1695_s0, %s1387_s24  ;;  %v1430_v33 = vld [vmem:[%s1696_s1 + $0xb8] sm:$0xff]   ;;  %v1461_v57 = vld [vmem:[%s1698_s3 + $0x8] sm:$0xff]   ;;  %s1135_s24 = sshll.u32 %s1702_s25, 2 }
  0x11   : > { %1292 = vmatpush3.bf16.msra.mxu1 %v1407_v11  ;;  %v1427_v31 = vld [vmem:[%s1609_s10] ss:$20 sps:$4 sm:$0xff]   ;;  %v1429_v32 = vld [vmem:[%s1609_s10 + $0x4] ss:$20 sps:$4 sm:$0xff]   ;;  %v1432_v35 = vld [vmem:[%s1609_s10 + $0x8] ss:$20 sps:$4 sm:$0xff]   ;;  %s1686_s28 = scalar_lea.vmem %s1700_s5, %s1135_s24 }
  0x12   : > { %1293 = vmatprep.subr.bf16.mxu1 %v1410_v14  ;;  %696 = vmatprep.mubr.bf16.mxu0 %v1429_v32  ;;  %v1434_v36 = vld [vmem:[%s1609_s10 + $0xc] ss:$20 sps:$4 sm:$0xff]   ;;  %v1439_v39 = vld [vmem:[%s1609_s10 + $0x34] ss:$20 sps:$4 sm:$0xff]   ;;  %v1441_v43 = vld [vmem:[%s1609_s10 + $0x30] ss:$20 sps:$4 sm:$0xff]  }
  0x13   : > { %1254 = vmatpush3.bf16.msra.mxu0 %v1409_v13  ;;  %v1435_v37 = vld [vmem:[%s1609_s10 + $0x2c] ss:$20 sps:$4 sm:$0xff]   ;;  %761 = vmatprep.mubr.bf16.mxu1 %v1434_v36  ;;  %v1437_v40 = vld [vmem:[%s1609_s10 + $0x28] ss:$20 sps:$4 sm:$0xff]   ;;  %v1445_v42 = vld [vmem:[%s1696_s1 + $0x110] sm:$0xff]  }
  0x14   : > { %1255 = vmatprep.subr.bf16.mxu0 %v1412_v16  ;;  %v1442_v41 = vld [vmem:[%s1609_s10 + $0x54] ss:$20 sps:$4 sm:$0xff]   ;;  %v1446_v44 = vld [vmem:[%s1609_s10 + $0x5c] ss:$20 sps:$4 sm:$0xff]   ;;  %v1448_v48 = vld [vmem:[%s1609_s10 + $0x58] ss:$20 sps:$4 sm:$0xff]  }
  0x15   : > { %1294 = vmatpush3.bf16.msra.mxu1 %v1411_v15  ;;  %v1452_v45 = vld [vmem:[%s1696_s1 + $0x118] sm:$0xff]   ;;  %v1444_v46 = vld [vmem:[%s1609_s10 + $0x50] ss:$20 sps:$4 sm:$0xff]   ;;  %v1455_v52 = vld [vmem:[%s1609_s10 + $0x80] ss:$20 sps:$4 sm:$0xff]  }
  0x16   : > { %1295 = vmatprep.subr.bf16.mxu1 %v1414_v18  ;;  %v1449_v47 = vld [vmem:[%s1609_s10 + $0x7c] ss:$20 sps:$4 sm:$0xff]   ;;  %v1453_v49 = vld [vmem:[%s1609_s10 + $0x84] ss:$20 sps:$4 sm:$0xff]   ;;  %v1458_v54 = vld [vmem:[%s1609_s10 + $0x60] ss:$20 sps:$4 sm:$0xff]  }
  0x17   : > { %1256 = vmatpush3.bf16.msra.mxu0 %v1413_v17  ;;  %v1451_v50 = vld [vmem:[%s1609_s10 + $0x78] ss:$20 sps:$4 sm:$0xff]   ;;  %v1456_v51 = vld [vmem:[%s1609_s10 + $0x10] ss:$20 sps:$4 sm:$0xff]   ;;  %v1459_v55 = vld [vmem:[%s1609_s10 + $0x88] ss:$20 sps:$4 sm:$0xff]  }
  0x18   : > { %1257 = vmatprep.subr.bf16.mxu0 %v1416_v20  ;;  %v1457_v53 = vld [vmem:[%s1609_s10 + $0x38] ss:$20 sps:$4 sm:$0xff]   ;;  %v1462_v58 = vld [vmem:[%s1698_s3 + $0x10] sm:$0xff]   ;;  %v1464_v60 = vld [vmem:[%s1698_s3 + $0x20] sm:$0xff]  }
  0x19   : > { %1296 = vmatpush3.bf16.msra.mxu1 %v1415_v19  ;;  %v1463_v59 = vld [vmem:[%s1698_s3 + $0x18] sm:$0xff]   ;;  %v1465_v61 = vld [vmem:[%s1698_s3 + $0x28] sm:$0xff]   ;;  %v1466_v62 = vld [vmem:[%s1698_s3 + $0x30] sm:$0xff]  }
  0x1a   : > { %1297 = vmatprep.subr.bf16.mxu1 %v1418_v22  ;;  %v1467_v63 = vld [vmem:[%s1698_s3 + $0x38] sm:$0xff]   ;;  %v1136_v1 = vld [vmem:[%s1697_s2] ss:$0 sm:$0xff] }
  0x1b   : > { %1258 = vmatpush3.bf16.msra.mxu0 %v1417_v21 }
  0x1c   : > { %1259 = vmatprep.subr.bf16.mxu0 %v1420_v24 }
  0x1d   : > { %1298 = vmatpush3.bf16.msra.mxu1 %v1419_v23 }
  0x1e   : > { %1299 = vmatprep.subr.bf16.mxu1 %v1422_v26 }
  0x1f   : > { %1260 = vmatpush3.bf16.msra.mxu0 %v1421_v25 }
  0x20   : > { %1261 = vmatprep.subr.bf16.mxu0 %v1424_v28 }
  0x21   : > { %1300 = vmatpush3.bf16.msra.mxu1 %v1423_v27 }
  0x22   : > { %1301 = vmatprep.subr.bf16.mxu1 %v1426_v30 }
  0x23   : > { %1262 = vmatpush3.bf16.msra.mxu0 %v1425_v29 }
  0x24   : > { %1347 = vmatprep.subr.bf16.mxu0 %v1431_v34 }
  0x25   : > { %1302 = vmatpush3.bf16.msra.mxu1 %v1430_v33 }
  0x26   : > { %697 = vmatmul.mubr.bf16.vlgmr.msra.gmra.mrb[0].mxu0 %v1427_v31  ;;  %1363 = vmatprep.subr.bf16.mxu1 %v1460_v56 }
  0x27   : > { %1348 = vmatpush3.bf16.msra.mxu0 %v1431_v34  ;;  %704 = vmatprep.mubr.bf16.mxu0 %v1435_v37 }
  0x28   : > { %762 = vmatmul.mubr.bf16.vlgmr.msra.gmra.mrb[0].mxu1 %v1432_v35  ;;  %1349 = vmatprep.subr.bf16.mxu0 %v1438_v38 }
  0x29   : > { %769 = vmatprep.mubr.bf16.mxu1 %v1439_v39  ;;  %1364 = vmatpush3.bf16.msra.mxu1 %v1460_v56 }
  0x2a   : > { %1365 = vmatprep.subr.bf16.mxu1 %v1461_v57 }
  0x2b   : > { %1350 = vmatpush3.bf16.msra.mxu0 %v1438_v38 }
  0x2c   : > { %1351 = vmatprep.subr.bf16.mxu0 %v1445_v42 }
  0x2d   : > { %1366 = vmatpush3.bf16.msra.mxu1 %v1461_v57 }
  0x2e   : > { %705 = vmatmul.mubr.bf16.gmra.mrb[4].mxu0 %v1437_v40  ;;  %1367 = vmatprep.subr.bf16.mxu1 %v1462_v58 }
  0x2f   : > { %712 = vmatprep.mubr.bf16.mxu0 %v1442_v41  ;;  %1352 = vmatpush3.bf16.msra.mxu0 %v1445_v42 }
  0x30   : > { %770 = vmatmul.mubr.bf16.gmra.mrb[4].mxu1 %v1441_v43  ;;  %1353 = vmatprep.subr.bf16.mxu0 %v1452_v45 }
  0x31   : > { %777 = vmatprep.mubr.bf16.mxu1 %v1446_v44  ;;  %1368 = vmatpush3.bf16.msra.mxu1 %v1462_v58 }
  0x32   : > { %1369 = vmatprep.subr.bf16.mxu1 %v1463_v59 }
  0x33   : > { %1354 = vmatpush3.bf16.msra.mxu0 %v1452_v45 }
  0x35   : > { %1370 = vmatpush3.bf16.msra.mxu1 %v1463_v59 }
  0x36   : > { %713 = vmatmul.mubr.bf16.gmra.mrb[8].mxu0 %v1444_v46  ;;  %1371 = vmatprep.subr.bf16.mxu1 %v1464_v60 }
  0x37   : > { %720 = vmatprep.mubr.bf16.mxu0 %v1449_v47 }
  0x38   : > { %778 = vmatmul.mubr.bf16.gmra.mrb[8].mxu1 %v1448_v48 }
  0x39   : > { %785 = vmatprep.mubr.bf16.mxu1 %v1453_v49  ;;  %1372 = vmatpush3.bf16.msra.mxu1 %v1464_v60 }
  0x3a   : > { %1373 = vmatprep.subr.bf16.mxu1 %v1465_v61 }
  0x3d   : > { %1374 = vmatpush3.bf16.msra.mxu1 %v1465_v61 }
  0x3e   : > { %721 = vmatmul.mubr.bf16.gmra.mrb[12].mxu0 %v1451_v50  ;;  %1375 = vmatprep.subr.bf16.mxu1 %v1466_v62 }
  0x3f   : > { %1355 = vmatprep.mubr.msk.bf16.mxu0 %vm651_vm0, %v1456_v51 }
  0x40   : > { %786 = vmatmul.mubr.bf16.gmra.mrb[12].mxu1 %v1455_v52 }
  0x41   : > { %1376 = vmatpush3.bf16.msra.mxu1 %v1466_v62 }
  0x42   : > { %1377 = vmatprep.subr.bf16.mxu1 %v1467_v63 }
  0x45   : > { %1378 = vmatpush3.bf16.msra.mxu1 %v1467_v63 }
  0x46   : > { %1356 = vmatmul.mubr.msk.bf16.vlgmr.msra.gmra.mrb[16].mxu0 %vm651_vm0, %v1457_v53 }
  0x47   : > { %1359 = vmatprep.mubr.msk.bf16.mxu0 %vm651_vm0, %v1458_v54 }
  0x4e   : > { %1360 = vmatmul.mubr.msk.bf16.gmra.mrb[20].mxu0 %vm651_vm0, %v1459_v55 }
  0xf9   : > { %v1263_v0 = vpop.f32.mrb[0].mxu0 }
  0xfa   : > { %v1264_v2 = vpop.f32.mrb[1].mxu0 }
  0xfb   : > { %v1265_v3 = vadd.f32 %v1264_v2, %v1263_v0  ;;  %v1266_v4 = vpop.f32.mrb[2].mxu0  ;;  %v1303_v5 = vpop.f32.mrb[0].mxu1 }
  0xfc   : > { %v1267_v6 = vpop.f32.mrb[3].mxu0  ;;  %v1304_v9 = vpop.f32.mrb[1].mxu1 }
  0xfd   : > { %v699_v7 = vadd.f32 %v1265_v3, %v1136_v1  ;;  %v1268_v8 = vadd.f32 %v1267_v6, %v1266_v4  ;;  %v1305_v10 = vadd.f32 %v1304_v9, %v1303_v5  ;;  %v1306_v11 = vpop.f32.mrb[2].mxu1 }
  0xfe   : > { %v1307_v13 = vpop.f32.mrb[3].mxu1 }
  0xff   : > { %v702_v12 = vadd.f32 %v1268_v8, %v1136_v1  ;;  %v1308_v14 = vadd.f32 %v1307_v13, %v1306_v11  ;;  %v764_v15 = vadd.f32 %v1305_v10, %v699_v7 }
 0x101   : > { %v1269_v16 = vpop.f32.mrb[4].mxu0  ;;  %v767_v18 = vadd.f32 %v1308_v14, %v702_v12 }
 0x102   : > { %v1270_v17 = vpop.f32.mrb[5].mxu0 }
 0x103   : > { %v1271_v19 = vadd.f32 %v1270_v17, %v1269_v16  ;;  %v1272_v20 = vpop.f32.mrb[6].mxu0  ;;  %v1309_v21 = vpop.f32.mrb[4].mxu1 }
 0x104   : > { %v1273_v22 = vpop.f32.mrb[7].mxu0  ;;  %v1310_v25 = vpop.f32.mrb[5].mxu1 }
 0x105   : > { %v707_v23 = vadd.f32 %v1271_v19, %v1136_v1  ;;  %v1274_v24 = vadd.f32 %v1273_v22, %v1272_v20  ;;  %v1311_v26 = vadd.f32 %v1310_v25, %v1309_v21  ;;  %v1312_v27 = vpop.f32.mrb[6].mxu1 }
 0x106   : > { %v1313_v29 = vpop.f32.mrb[7].mxu1 }
 0x107   : > { %v710_v28 = vadd.f32 %v1274_v24, %v1136_v1  ;;  %v1314_v30 = vadd.f32 %v1313_v29, %v1312_v27  ;;  %v772_v31 = vadd.f32 %v1311_v26, %v707_v23  ;;  %v1197_v29 = vld [vmem:[%s1699_s4] ss:$0 sm:$0xff] }
 0x109   : > { %v1275_v32 = vpop.f32.mrb[8].mxu0  ;;  %v775_v34 = vadd.f32 %v1314_v30, %v710_v28 }
 0x10a   : > { %v1276_v33 = vpop.f32.mrb[9].mxu0 }
 0x10b   : > { %v1277_v35 = vadd.f32 %v1276_v33, %v1275_v32  ;;  %v1278_v36 = vpop.f32.mrb[10].mxu0  ;;  %v1315_v37 = vpop.f32.mrb[8].mxu1 }
 0x10c   : > { %v1279_v38 = vpop.f32.mrb[11].mxu0  ;;  %v1316_v41 = vpop.f32.mrb[9].mxu1 }
 0x10d   : > { %v715_v39 = vadd.f32 %v1277_v35, %v1136_v1  ;;  %v1280_v40 = vadd.f32 %v1279_v38, %v1278_v36  ;;  %v1317_v42 = vadd.f32 %v1316_v41, %v1315_v37  ;;  %v1318_v43 = vpop.f32.mrb[10].mxu1 }
 0x10e   : > { %v1319_v45 = vpop.f32.mrb[11].mxu1 }
 0x10f   : > { %v718_v44 = vadd.f32 %v1280_v40, %v1136_v1  ;;  %v1320_v46 = vadd.f32 %v1319_v45, %v1318_v43  ;;  %v780_v47 = vadd.f32 %v1317_v42, %v715_v39 }
 0x111   : > { %v1281_v48 = vpop.f32.mrb[12].mxu0  ;;  %v783_v50 = vadd.f32 %v1320_v46, %v718_v44 }
 0x112   : > { %v1282_v49 = vpop.f32.mrb[13].mxu0 }
 0x113   : > { %v1283_v51 = vadd.f32 %v1282_v49, %v1281_v48  ;;  %v1284_v52 = vpop.f32.mrb[14].mxu0  ;;  %v1321_v53 = vpop.f32.mrb[12].mxu1 }
 0x114   : > { %v1285_v54 = vpop.f32.mrb[15].mxu0  ;;  %v1322_v57 = vpop.f32.mrb[13].mxu1 }
 0x115   : > { %v723_v55 = vadd.f32 %v1283_v51, %v1136_v1  ;;  %v1286_v56 = vadd.f32 %v1285_v54, %v1284_v52  ;;  %v1323_v58 = vadd.f32 %v1322_v57, %v1321_v53  ;;  %v1324_v59 = vpop.f32.mrb[14].mxu1 }
 0x116   : > { %v1325_v61 = vpop.f32.mrb[15].mxu1 }
 0x117   : > { %v726_v60 = vadd.f32 %v1286_v56, %v1136_v1  ;;  %v1326_v62 = vadd.f32 %v1325_v61, %v1324_v59  ;;  %v788_v63 = vadd.f32 %v1323_v58, %v723_v55 }
 0x119   : > { %v1357_v0 = vpop.f32.mrb[16].mxu0  ;;  %v791_v4 = vadd.f32 %v1326_v62, %v726_v60 }
 0x11a   : > { %v837_v2 = vadd.f32 %v1357_v0, %v772_v31  ;;  %v828_v3 = vpop.f32.mrb[17].mxu0 }
 0x11b   : > { %v829_v5 = vadd.f32 %v828_v3, %v764_v15  ;;  %v1358_v6 = vpop.f32.mrb[18].mxu0 }
 0x11c   : > { %v840_v7 = vadd.f32 %v1358_v6, %v775_v34  ;;  %v831_v8 = vpop.f32.mrb[19].mxu0  ;;  %v861_v10 = vmax.f32 %v837_v2, 0.0 }
 0x11d   : > { %v832_v9 = vadd.f32 %v831_v8, %v767_v18  ;;  %v859_v12 = vmax.f32 %v829_v5, 0.0 }
 0x11e   : > { %v862_v11 = vmax.f32 %v840_v7, 0.0 }
 0x11f   : > { %v860_v13 = vmax.f32 %v832_v9, 0.0 }
 0x120   : > { %v868_v14 = vpack.c.bf16 %v862_v11, %v861_v10 }
 0x121   : > { %v867_v16 = vpack.c.bf16 %v860_v13, %v859_v12  ;;  %v1361_v17 = vpop.f32.mrb[20].mxu0 }
 0x122   : > { %v853_v1 = vadd.f32 %v1361_v17, %v788_v63  ;;  %v844_v19 = vpop.f32.mrb[21].mxu0 }
 0x123   : > { %v845_v20 = vadd.f32 %v844_v19, %v780_v47  ;;  %v1362_v21 = vpop.f32.mrb[22].mxu0  ;;  %1379 = vmatprep.mubr.bf16.mxu1 %v867_v16 }
 0x124   : > { %v856_v22 = vadd.f32 %v1362_v21, %v791_v4  ;;  %v847_v23 = vpop.f32.mrb[23].mxu0  ;;  %1380 = vmatmul.mubr.bf16.vlgmr.msra.gmra.mrb[16].mxu1 %v868_v14  ;;  %v865_v24 = vmax.f32 %v853_v1, 0.0 }
 0x125   : > { %v848_v15 = vadd.f32 %v847_v23, %v783_v50  ;;  %v863_v26 = vmax.f32 %v845_v20, 0.0 }
 0x126   : > { %v866_v25 = vmax.f32 %v856_v22, 0.0 }
 0x127   : > { %v864_v18 = vmax.f32 %v848_v15, 0.0 }
 0x128   : > { %v870_v27 = vpack.c.bf16 %v866_v25, %v865_v24 }
 0x129   : > { %v869_v28 = vpack.c.bf16 %v864_v18, %v863_v26 }
 0x12b   : > { %1383 = vmatprep.mubr.bf16.mxu1 %v869_v28 }
 0x12c   : > { %1384 = vmatmul.mubr.bf16.gmra.mrb[20].mxu1 %v870_v27 }
 0x1f7   : > { %v1381_v30 = vpop.f32.mrb[16].mxu1 }
 0x1f8   : > { %v985_v31 = vadd.f32 %v1381_v30, %v1197_v29  ;;  %v976_v32 = vpop.f32.mrb[17].mxu1 }
 0x1f9   : > { %v977_v33 = vadd.f32 %v1197_v29, %v976_v32  ;;  %v1382_v34 = vpop.f32.mrb[18].mxu1 }
 0x1fa   : > { %v1017_v35 = vmul.f32 0.2, %v985_v31  ;;  %v988_v36 = vadd.f32 %v1382_v34, %v1197_v29  ;;  %v979_v37 = vpop.f32.mrb[19].mxu1  ;;  %vm1009_vm1 = vcmp.ge.f32.partialorder %v985_v31, 0.0 }
 0x1fb   : > { %v1015_v38 = vmul.f32 0.2, %v977_v33  ;;  %v980_v39 = vadd.f32 %v1197_v29, %v979_v37  ;;  %vm1007_vm2 = vcmp.ge.f32.partialorder %v977_v33, 0.0 }
 0x1fc   : > { %vm1010_vm3 = vcmp.ge.f32.partialorder %v988_v36, 0.0  ;;  %v1018_v40 = vmul.f32 0.2, %v988_v36  ;;  %v1025_v42 = vsel %vm1009_vm1, %v985_v31, %v1017_v35 }
 0x1fd   : > { %vm1008_vm4 = vcmp.ge.f32.partialorder %v980_v39, 0.0  ;;  %v1016_v41 = vmul.f32 0.2, %v980_v39  ;;  %v1023_v44 = vsel %vm1007_vm2, %v977_v33, %v1015_v38 }
 0x1fe   : > { %v1026_v43 = vsel %vm1010_vm3, %v988_v36, %v1018_v40 }
 0x1ff   : > { %v1232_v45 = vpack.c.bf16 %v1026_v43, %v1025_v42  ;;  %v1024_v46 = vsel %vm1008_vm4, %v980_v39, %v1016_v41  ;;  %v1385_v47 = vpop.f32.mrb[20].mxu1 }
 0x200   : > { %v1227_v48 = vpack.c.bf16 %v1024_v46, %v1023_v44  ;;  %v1001_v49 = vadd.f32 %v1385_v47, %v1197_v29  ;;  %v992_v50 = vpop.f32.mrb[21].mxu1 }
 0x201   : > { %1244 = vst [vmem:[%s1686_s28 + $0x8] sm:$0xff] %v1232_v45   ;;  %v993_v51 = vadd.f32 %v1197_v29, %v992_v50  ;;  %v1386_v52 = vpop.f32.mrb[22].mxu1 }
 0x202   : > { %1228 = vst [vmem:[%s1686_s28] sm:$0xff] %v1227_v48   ;;  %v1021_v53 = vmul.f32 0.2, %v1001_v49  ;;  %v1004_v54 = vadd.f32 %v1386_v52, %v1197_v29  ;;  %v995_v55 = vpop.f32.mrb[23].mxu1  ;;  %vm1013_vm5 = vcmp.ge.f32.partialorder %v1001_v49, 0.0 }
 0x203   : > { %v1019_v56 = vmul.f32 0.2, %v993_v51  ;;  %v996_v57 = vadd.f32 %v1197_v29, %v995_v55  ;;  %vm1011_vm6 = vcmp.ge.f32.partialorder %v993_v51, 0.0 }
 0x204   : > { %vm1014_vm7 = vcmp.ge.f32.partialorder %v1004_v54, 0.0  ;;  %v1022_v58 = vmul.f32 0.2, %v1004_v54  ;;  %v1029_v60 = vsel %vm1013_vm5, %v1001_v49, %v1021_v53 }
 0x205   : > { %vm1012_vm8 = vcmp.ge.f32.partialorder %v996_v57, 0.0  ;;  %v1020_v59 = vmul.f32 0.2, %v996_v57  ;;  %v1027_v62 = vsel %vm1011_vm6, %v993_v51, %v1019_v56 }
 0x206   : > { %v1030_v61 = vsel %vm1014_vm7, %v1004_v54, %v1022_v58 }
 0x207   : > { %v1242_v63 = vpack.c.bf16 %v1030_v61, %v1029_v60  ;;  %v1028_v0 = vsel %vm1012_vm8, %v996_v57, %v1020_v59 }
 0x208   : > { %v1237_v2 = vpack.c.bf16 %v1028_v0, %v1027_v62 }
 0x209   : > { %1246 = vst [vmem:[%s1686_s28 + $0x18] sm:$0xff] %v1242_v63  }
 0x20a   : > { %1245 = vst [vmem:[%s1686_s28 + $0x10] sm:$0xff] %v1237_v2  }
 0x20b PF: > { %s15_s18 = sadd.s32 1, %s1474_s18  }
 0x20c   : > { %p12_p4 = scmp.ge.s32.totalorder %s15_s18, 4  }
 0x20e   :  { %14 = sbr.rel (!%p12_p4) target bundleno = 1 (0x1), region = 70 }

// kernel: feature_matching_forward.13
= control target key start
LH: loop header
LB: loop body
LE: loop exit
PB: predicated region body
PF: predicated region fallthrough
CT: control target
= control target key end

     0   :  { %9 = vsyncpa [#allocation5], 0  ;;  %s1069_s0 = inlined_call_operand.vmem [shape: bf16[2,64,144], index: 0, kind: input, shape index: {}]   ;;  %s1070_s1 = inlined_call_operand.vmem [shape: bf16[2,144,128], index: 1, kind: input, shape index: {}]   ;;  %s1071_s2 = inlined_call_operand.vmem [shape: f32[2,1,128], index: 2, kind: output, shape index: {0}]   ;;  %s1072_s3 = inlined_call_operand.hbm [shape: s32[2,1,128], index: 3, kind: output, shape index: {1}]  }
   0x1   :  { %11 = vsyncpa [#allocation5 + $0x1], 0  ;;  %s919_s12 = smov 0   ;;  %s921_s13 = smov 0  }
   0x2   :  { %s923_s14 = smov 0   ;;  %s925_s15 = smov 0  }
   0x3   :  { %s927_s16 = smov 0   ;;  %s929_s17 = smov 0  }
   0x4 LB: > { %s686_s18 = sadd.s32 4294967295, %s894_s17   ;;  %s687_s19 = sadd.s32 4294967294, %s894_s17   ;;  %s894_s17 = sphi %s929_s17, %s17_s17   ;;  %s890_s16 = sphi %s927_s16, %s1079_s16   ;;  %s886_s15 = sphi %s925_s15, %s1078_s15   ;;  %s882_s14 = sphi %s923_s14, %s1077_s14   ;;  %s878_s13 = sphi %s921_s13, %s1076_s13   ;;  %s874_s12 = sphi %s919_s12, %s1075_s12  }
   0x5   : > { %s36_s20 = sadd.s32 1, %s890_s16  ;;  %s129_s21 = sadd.s32 1, %s882_s14 }
   0x6   : > { %p38_p0 = scmp.ge.s32.totalorder %s36_s20, 2  ;;  %p139_p1 = scmp.ne.s32.totalorder %s882_s14, %s878_s13 }
   0x7   : > { %p140_p2 = scmp.eq.s32.totalorder %s686_s18, 1  ;;  %p145_p3 = scmp.ne.s32.totalorder %s878_s13, %s874_s12 }
   0x8   : > { %s1081_s20 = smov (%p38_p0, %s36_s20), 0  ;;  %p146_p5 = scmp.eq.s32.totalorder %s687_s19, 1 }
   0x9   : > { %p959_p4 = por %p140_p2, %p139_p1  ;;  %s124_s23 = ssub.s32 %s890_s16, %s1081_s20 }
   0xa   : > { %p690_p6 = scmp.ge.s32.totalorder %s894_s17, 1  ;;  %p127_p7 = scmp.eq.s32.totalorder %s124_s23, 0 }
   0xb   : > { %p966_p8 = por %p146_p5, %p145_p3  ;;  %p189_p9 = scmp.lt.s32.totalorder %s894_s17, 3 }
   0xc   : > { %s972_s25 = scalar_select %p127_p7, %s882_s14, %s129_s21  }
   0xd   : > { %p190_p10 = pnand %p690_p6, %p189_p9 }
   0xe   : > { %p232_p11 = scmp.lt.s32.totalorder (!%p190_p10), %s886_s15, 1  ;;  %v896_v0 = vmov (!%p190_p10), 0   ;;  %vm379_vm0 = vcmask (!%p190_p10), 130048   ;;  %v897_v18 = vmov (!%p190_p10), -inf   ;;  %v457_v43 = vlaneseq (!%p190_p10)  ;;  %s229_s11 = sand.u32 (!%p190_p10), 1, %s878_s13  }
   0xf   : > { %193 = sbr.rel (%p190_p10) target bundleno = 348 (0x15c), region = 28  ;;  %392 = vmatprep.subr.bf16.mxu0 (!%p190_p10), %v896_v0  ;;  %262 = vst [vmem:[#allocation3] sm:$0x1] (!%p190_p10), %v896_v0  ;;  %719 = vmatprep.subr.bf16.mxu1 (!%p190_p10), %v896_v0  ;;  %261 = vst [vmem:[#allocation2] sm:$0x1] (!%p190_p10), %v897_v18  ;;  %s715_s18 = sshll.u32 (!%p190_p10), %s886_s15, 4 }
  0x10   : > { %v458_v46 = vshrl.u32 (!%p190_p10), %v457_v43, 7  ;;  %s230_s19 = scalar_lea.vmem (!%p190_p10), [#allocation4], %s229_s11 }
  0x11   : > { %s566_s21 = sshll.u32 (!%p190_p10), %s230_s19, 4  ;;  %s1024_s21 = int_to_ptr.vmem [resolvable:$true] %s566_s21 }
  0x12   : > { %v459_v49 = vadd.s32 (!%p190_p10), 8, %v458_v46  ;;  %v460_v50 = vadd.s32 (!%p190_p10), 16, %v458_v46  ;;  %v461_v51 = vadd.s32 (!%p190_p10), 24, %v458_v46  ;;  %v462_v53 = vadd.s32 (!%p190_p10), 32, %v458_v46  ;;  %s816_s29 = scalar_lea.vmem (!%p190_p10), %s1024_s21, 16 }
  0x13   : > { %v463_v54 = vadd.s32 (!%p190_p10), 40, %v458_v46  ;;  %v464_v55 = vadd.s32 (!%p190_p10), 48, %v458_v46  ;;  %v465_v56 = vadd.s32 (!%p190_p10), 56, %v458_v46  ;;  %p817_p12 = scmp.ne.s32.totalorder (!%p190_p10), %s1024_s21, %s816_s29 }
  0x15   : > { %p818_p13 = pnand (!%p190_p10), %p817_p12, %p959_p4 }
  0x16   : > { %s976_s26 = scalar_select %p232_p11, %s886_s15, 1 }
  0x17   : > { %p819_p0 = pneg %p818_p13  ;;  %s898_s15 = smov [#allocation4]  }
  0x18   : > { %s737_s27 = smul.u32 72, %s976_s26  ;;  %s718_s28 = sshll.u32 %s976_s26, 6 }
  0x19   : > { %s983_s4 = scalar_lea.vmem %s1069_s0, %s718_s28  ;;  %s255_s10 = scalar_lea.vmem %s1071_s2, %s976_s26 }
  0x1a   : > { %s988_s7 = scalar_lea.vmem %s1070_s1, %s737_s27  ;;  %v806_v4 = vld [vmem:[%s983_s4 + $0x4] ss:$8 sps:$4 sm:$0xff]   ;;  %v804_v12 = vld [vmem:[%s983_s4] ss:$8 sps:$4 sm:$0xff]   ;;  %v810_v14 = vld [vmem:[%s983_s4 + $0x14] ss:$8 sps:$4 sm:$0xff]   ;;  %s1022_s27 = scalar_lea.hbm %s1072_s3, %s715_s18 }
  0x1b   : > { %v795_v1 = vld [vmem:[%s988_s7] sm:$0xff]   ;;  %v796_v2 = vld [vmem:[%s988_s7 + $0x8] sm:$0xff]   ;;  %v797_v3 = vld [vmem:[%s988_s7 + $0x10] sm:$0xff]   ;;  %711 = vmatprep.mubr.msk.bf16.mxu0 %vm379_vm0, %v806_v4  ;;  %s550_s28 = scalar_lea.sflag [#allocation5], %s229_s11  ;;  %s820_s30 = sshll.u32 %s898_s15, 4  ;;  %s821_s30 = int_to_ptr.vmem [resolvable:$false] %s820_s30 }
  0x1c   : > { %393 = vmatpush1.bf16.msra.mxu0 %v795_v1  ;;  %728 = vmatpush1.bf16.msra.mxu1 %v795_v1  ;;  %v798_v5 = vld [vmem:[%s988_s7 + $0x18] sm:$0xff]   ;;  %v809_v6 = vld [vmem:[%s983_s4 + $0x24] ss:$8 sps:$4 sm:$0xff]   ;;  %v801_v9 = vld [vmem:[%s988_s7 + $0x30] sm:$0xff]   ;;  %p823_p1 = scmp.lt.s32.totalorder %s1024_s21, %s821_s30 }
  0x1d   : > { %394 = vmatprep.subr.bf16.mxu0 %v896_v0  ;;  %720 = vmatprep.subr.bf16.mxu1 %v896_v0  ;;  %v799_v7 = vld [vmem:[%s988_s7 + $0x20] sm:$0xff]   ;;  %v800_v8 = vld [vmem:[%s988_s7 + $0x28] sm:$0xff]   ;;  %v802_v10 = vld [vmem:[%s988_s7 + $0x38] sm:$0xff]  }
  0x1e   : > { %713 = vmatprep.mubr.msk.bf16.mxu1 %vm379_vm0, %v809_v6  ;;  %v803_v11 = vld [vmem:[%s988_s7 + $0x40] sm:$0xff]   ;;  %v812_v15 = vld [vmem:[%s983_s4 + $0x34] ss:$8 sps:$4 sm:$0xff]   ;;  %v814_v16 = vld [vmem:[%s983_s4 + $0x10] ss:$8 sps:$4 sm:$0xff]  }
  0x1f   : > { %v807_v13 = vld [vmem:[%s983_s4 + $0x20] ss:$8 sps:$4 sm:$0xff]   ;;  %v815_v17 = vld [vmem:[%s983_s4 + $0x30] ss:$8 sps:$4 sm:$0xff]   ;;  %s822_s4 = scalar_lea.vmem %s821_s30, 32 }
  0x20   : > { %395 = vmatpush1.bf16.msra.mxu0 %v796_v2  ;;  %729 = vmatpush1.bf16.msra.mxu1 %v796_v2  ;;  %v528_v1 = vld [vmem:[#allocation2] sm:$0x1]  ;;  %p824_p2 = scmp.lt.s32.totalorder %s822_s4, %s816_s29 }
  0x21   : > { %396 = vmatprep.subr.bf16.mxu0 %v896_v0  ;;  %721 = vmatprep.subr.bf16.mxu1 %v896_v0  ;;  %v533_v2 = vld [vmem:[#allocation2] sm:$0x1] }
  0x22   : > { %p825_p3 = por %p824_p2, %p823_p1 }
  0x24   : > { %397 = vmatpush1.bf16.msra.mxu0 %v797_v3  ;;  %730 = vmatpush1.bf16.msra.mxu1 %v797_v3  ;;  %p826_p5 = pnand %p825_p3, %p819_p0 }
  0x25   : > { %398 = vmatprep.subr.bf16.mxu0 %v896_v0  ;;  %722 = vmatprep.subr.bf16.mxu1 %v896_v0 }
  0x28   : > { %399 = vmatpush1.bf16.msra.mxu0 %v798_v5  ;;  %731 = vmatpush1.bf16.msra.mxu1 %v798_v5 }
  0x29   : > { %400 = vmatprep.subr.bf16.mxu0 %v896_v0  ;;  %723 = vmatprep.subr.bf16.mxu1 %v896_v0 }
  0x2c   : > { %401 = vmatpush1.bf16.msra.mxu0 %v799_v7  ;;  %732 = vmatpush1.bf16.msra.mxu1 %v799_v7 }
  0x2d   : > { %402 = vmatprep.subr.bf16.mxu0 %v896_v0  ;;  %724 = vmatprep.subr.bf16.mxu1 %v896_v0 }
  0x30   : > { %403 = vmatpush1.bf16.msra.mxu0 %v800_v8  ;;  %733 = vmatpush1.bf16.msra.mxu1 %v800_v8 }
  0x31   : > { %404 = vmatprep.subr.bf16.mxu0 %v896_v0  ;;  %725 = vmatprep.subr.bf16.mxu1 %v896_v0 }
  0x34   : > { %405 = vmatpush1.bf16.msra.mxu0 %v801_v9  ;;  %734 = vmatpush1.bf16.msra.mxu1 %v801_v9 }
  0x35   : > { %406 = vmatprep.subr.bf16.mxu0 %v896_v0  ;;  %726 = vmatprep.subr.bf16.mxu1 %v896_v0 }
  0x38   : > { %407 = vmatpush1.bf16.msra.mxu0 %v802_v10  ;;  %735 = vmatpush1.bf16.msra.mxu1 %v802_v10 }
  0x39   : > { %408 = vmatprep.subr.bf16.mxu0 %v896_v0  ;;  %727 = vmatprep.subr.bf16.mxu1 %v896_v0 }
  0x3c   : > { %409 = vmatpush1.bf16.msra.mxu0 %v803_v11  ;;  %736 = vmatpush1.bf16.msra.mxu1 %v803_v11 }
  0x3f   : > { %425 = vmatmul.mubr.bf16.vlgmr.msra.gmra.mrb[0].mxu0 %v804_v12  ;;  %441 = vmatmul.mubr.bf16.vlgmr.msra.gmra.mrb[0].mxu1 %v807_v13 }
  0x40   : > { %712 = vmatprep.mubr.msk.bf16.mxu0 %vm379_vm0, %v810_v14  ;;  %714 = vmatprep.mubr.msk.bf16.mxu1 %vm379_vm0, %v812_v15 }
  0x47   : > { %433 = vmatmul.mubr.bf16.gmra.mrb[4].mxu0 %v814_v16  ;;  %449 = vmatmul.mubr.bf16.gmra.mrb[4].mxu1 %v815_v17  ;;  %v530_v17 = vld [vmem:[#allocation3] sm:$0x1] }
 0x112   : > { %v426_v19 = vpop.f32.mrb[0].mxu0  ;;  %v442_v20 = vpop.f32.mrb[0].mxu1 }
 0x113   : > { %v476_v21 = vmax.f32 %v426_v19, %v442_v20  ;;  %v428_v22 = vpop.f32.mrb[1].mxu0  ;;  %v444_v23 = vpop.f32.mrb[1].mxu1 }
 0x114   : > { %v429_v24 = vpop.f32.mrb[2].mxu0  ;;  %v445_v25 = vpop.f32.mrb[2].mxu1 }
 0x115   : > { %v477_v26 = vmax.f32 %v429_v24, %v445_v25  ;;  %v431_v27 = vpop.f32.mrb[3].mxu0  ;;  %v447_v28 = vpop.f32.mrb[3].mxu1 }
 0x117   : > { %v480_v29 = vmax.f32 %v476_v21, %v477_v26 }
 0x11a   : > { %v434_v30 = vpop.f32.mrb[4].mxu0  ;;  %v450_v31 = vpop.f32.mrb[4].mxu1 }
 0x11b   : > { %v478_v32 = vmax.f32 %v434_v30, %v450_v31  ;;  %v436_v33 = vpop.f32.mrb[5].mxu0  ;;  %v452_v34 = vpop.f32.mrb[5].mxu1 }
 0x11c   : > { %v437_v35 = vpop.f32.mrb[6].mxu0  ;;  %v453_v36 = vpop.f32.mrb[6].mxu1 }
 0x11d   : > { %v479_v37 = vmax.f32 %v437_v35, %v453_v36  ;;  %v439_v38 = vpop.f32.mrb[7].mxu0  ;;  %v455_v39 = vpop.f32.mrb[7].mxu1 }
 0x11f   : > { %v481_v40 = vmax.f32 %v478_v32, %v479_v37 }
 0x121   : > { %v482_v41 = vmax.f32 %v480_v29, %v481_v40 }
 0x123   : > { %v483_v42 = vrot.slane %v482_v41, 4 }
 0x125   : > { %v484_v44 = vmax.f32 %v482_v41, %v483_v42 }
 0x127   : > { %v485_v45 = vrot.slane %v484_v44, 2 }
 0x129   : > { %v486_v47 = vmax.f32 %v484_v44, %v485_v45 }
 0x12b   : > { %v487_v48 = vrot.slane %v486_v47, 1 }
 0x12d   : > { %v488_v52 = vmax.f32 %v486_v47, %v487_v48 }
 0x12f   : > { %vm489_vm1 = vcmp.eq.f32.partialorder %v426_v19, %v488_v52  ;;  %vm490_vm2 = vcmp.eq.f32.partialorder %v429_v24, %v488_v52  ;;  %vm491_vm3 = vcmp.eq.f32.partialorder %v434_v30, %v488_v52  ;;  %vm492_vm4 = vcmp.eq.f32.partialorder %v437_v35, %v488_v52 }
 0x130   : > { %vm493_vm5 = vcmp.eq.f32.partialorder %v442_v20, %v488_v52  ;;  %vm494_vm6 = vcmp.eq.f32.partialorder %v445_v25, %v488_v52  ;;  %vm495_vm7 = vcmp.eq.f32.partialorder %v450_v31, %v488_v52  ;;  %vm496_vm8 = vcmp.eq.f32.partialorder %v453_v36, %v488_v52 }
 0x131   : > { %v497_v57 = vsel %vm489_vm1, %v458_v46, 1073741824  ;;  %v498_v58 = vsel %vm490_vm2, %v459_v49, 1073741824  ;;  %v499_v59 = vsel %vm491_vm3, %v460_v50, 1073741824  ;;  %v500_v60 = vsel %vm492_vm4, %v461_v51, 1073741824 }
 0x132   : > { %v501_v61 = vsel %vm493_vm5, %v462_v53, 1073741824  ;;  %v502_v62 = vsel %vm494_vm6, %v463_v54, 1073741824  ;;  %v503_v63 = vsel %vm495_vm7, %v464_v55, 1073741824  ;;  %v504_v0 = vsel %vm496_vm8, %v465_v56, 1073741824 }
 0x133   : > { %vm505_vm9 = vcmp.lt.s32.totalorder %v497_v57, %v501_v61  ;;  %vm507_vm10 = vcmp.lt.s32.totalorder %v498_v58, %v502_v62  ;;  %vm509_vm11 = vcmp.lt.s32.totalorder %v499_v59, %v503_v63  ;;  %vm511_vm12 = vcmp.lt.s32.totalorder %v500_v60, %v504_v0 }
 0x134   : > { %v506_v3 = vsel %vm505_vm9, %v497_v57, %v501_v61  ;;  %v508_v4 = vsel %vm507_vm10, %v498_v58, %v502_v62  ;;  %v510_v5 = vsel %vm509_vm11, %v499_v59, %v503_v63  ;;  %v512_v6 = vsel %vm511_vm12, %v500_v60, %v504_v0 }
 0x135   : > { %vm513_vm13 = vcmp.lt.s32.totalorder %v506_v3, %v508_v4  ;;  %vm515_vm14 = vcmp.lt.s32.totalorder %v510_v5, %v512_v6  ;;  %vm529_vm15 = vcmp.gt.f32.partialorder %v488_v52, %v528_v1 }
 0x136   : > { %v514_v7 = vsel %vm513_vm13, %v506_v3, %v508_v4  ;;  %v516_v8 = vsel %vm515_vm14, %v510_v5, %v512_v6  ;;  %v534_v9 = vsel %vm529_vm15, %v488_v52, %v533_v2 }
 0x137   : > { %vm517_vm0 = vcmp.lt.s32.totalorder %v514_v7, %v516_v8  ;;  %535 = vst [vmem:[#allocation2] sm:$0x1] %v534_v9 }
 0x138   : > { %v518_v10 = vsel %vm517_vm0, %v514_v7, %v516_v8 }
 0x139   : > { %v519_v11 = vrot.slane %v518_v10, 4 }
 0x13b   : > { %vm520_vm1 = vcmp.lt.s32.totalorder %v518_v10, %v519_v11 }
 0x13c   : > { %v521_v12 = vsel %vm520_vm1, %v518_v10, %v519_v11 }
 0x13d   : > { %v522_v13 = vrot.slane %v521_v12, 2 }
 0x13e   : > { %v539_v14 = vld [vmem:[#allocation2] sm:$0x1] }
 0x13f   : > { %vm523_vm2 = vcmp.lt.s32.totalorder %v521_v12, %v522_v13  ;;  %540 = vst [vmem:[%s255_s10] sm:$0x1] %v539_v14 }
 0x140   : > { %v524_v15 = vsel %vm523_vm2, %v521_v12, %v522_v13 }
 0x141   : > { %v525_v16 = vrot.slane %v524_v15, 1 }
 0x143   : > { %vm526_vm3 = vcmp.lt.s32.totalorder %v524_v15, %v525_v16 }
 0x144   : > { %v527_v18 = vsel %vm526_vm3, %v524_v15, %v525_v16 }
 0x145   : > { %v531_v19 = vsel %vm529_vm15, %v527_v18, %v530_v17 }
 0x146   : > { %532 = vst [vmem:[#allocation3] sm:$0x1] %v531_v19 }
 0x14d   : > { %v541_v20 = vld [vmem:[#allocation3] sm:$0x1] }
 0x14e   : > { %542 = vst [vmem:[%s230_s19] sm:$0x1] %v541_v20 }
 0x14f   : > { %829 = shalt.err (!%p826_p5)
}
 0x150   : > { %s830_s5 = scalar_lea.hbm %s1022_s27, 16  ;;  %s834_s8 = scalar_lea.hbm %s1072_s3, 32 }
 0x151   : > { %p831_p6 = scmp.ne.s32.totalorder %s1022_s27, %s830_s5  ;;  %p835_p10 = scmp.lt.u32.totalorder %s1022_s27, %s1072_s3 }
 0x152   : > { %p836_p11 = scmp.lt.u32.totalorder %s834_s8, %s830_s5  ;;  %p838_p13 = scmp.lt.u32.totalorder %s830_s5, %s1022_s27 }
 0x153   : > { %p832_p7 = pnand %p831_p6, %p959_p4 }
 0x154   : > { %p837_p12 = por %p836_p11, %p835_p10 }
 0x155   : > { %p833_p9 = pneg %p832_p7 }
 0x156   : > { %p839_p0 = por %p838_p13, %p837_p12 }
 0x158   : > { %p840_p1 = pnand %p839_p0, %p833_p9 }
 0x15a   : > { %843 = shalt.err (!%p840_p1)
}
 0x15b   : > { %738 = dma.vmem_to_hbm [thread:$0]  (%p959_p4), %s1024_s21, 16, %s1022_s27, %s550_s28  }
 0x15c PF: > { %p744_p2 = scmp.ge.s32.totalorder %s894_s17, 2  ;;  %s587_s11 = sand.u32 1, %s874_s12  }
 0x15d   : > { %s588_s18 = scalar_lea.sflag [#allocation5], %s587_s11 }
 0x15e   : > { %p741_p3 = pnand %p744_p2, %p966_p8 }
 0x160   : > { %869 = dma.done.wait (!%p741_p3), %s588_s18, 16  }
 0x161   : > { %871 = vsyncadd (!%p741_p3), %s588_s18, 4294967280  ;;  %s17_s17 = sadd.s32 1, %s894_s17   ;;  %s1075_s12 = smov %s878_s13 }
 0x162   : > { %p14_p5 = scmp.ge.s32.totalorder %s17_s17, 4   ;;  %s1076_s13 = smov %s882_s14 }
 0x163   : > { %s1077_s14 = smov %s972_s25  ;;  %s1078_s15 = smov %s890_s16 }
 0x164   : > { %s1079_s16 = smov %s1081_s20  ;;  %16 = sbr.rel (!%p14_p5) target bundleno = 4 (0x4), region = 86 }
 0x16b   :  { %592 = vsyncpa [#allocation5], 1 }
 0x16c   :  { %594 = vsyncpa [#allocation5 + $0x1], 1 }

</bundles_post_ra>
